<compile_context>
chip_gen: v6e
topology: v6e:2x2x1
jax: 0.10.0
libtpu: 0.0.40
codegen_flags: <defaults>
</compile_context>

<pallas_src>
import functools

import jax
import jax.numpy as jnp
from jax import lax
from jax.experimental import pallas as pl
from jax.experimental.pallas import tpu as pltpu

NEG_INF = -1.0e30     # big-negative sentinel instead of -inf (avoids inf-inf NaNs)
INF_THRESH = 1.0e29


# --------------------------------------------------------------------------- #
# Tiling plan (batch tile, time tile, VMEM budget)                             #
# --------------------------------------------------------------------------- #
def _plan_tiles(N, T, C, S, itemsize, t_tile_cap):
    L_ext = 2 * S + 1
    L_pad = max(128, ((L_ext + 127) // 128) * 128)

    # Batch tile: pack samples into sublanes. Cap so each live temporary in the
    # recurrence is <= ~4 vregs, and keep >= 2 grid steps on the parallel batch
    # axis (v7x has 2 TensorCores) when the batch is big enough.
    lane_tiles = L_pad // 128
    max_b = max(8, 8 * max(1, 4 // lane_tiles))
    half8 = ((max(1, (N + 1) // 2) + 7) // 8) * 8
    B = max(8, min(max_b, half8))
    N_pad = ((N + B - 1) // B) * B

    # Per-chip VMEM capacity (64 MiB v7x, 128 MiB v5e/v6e); conservative fallback.
    try:
        vmem_cap = int(pltpu.get_tpu_info().vmem_capacity_bytes)
    except Exception:
        vmem_cap = 64 * 1024 * 1024

    # Time tile from a VMEM byte budget.
    budget = int(vmem_cap * 0.55)
    fixed = (B * C * L_pad * itemsize          # hoisted one-hot scratch
             + 2 * B * L_pad * 4               # labels block (double buffered)
             + 2 * B * 128 * 4                 # loss block (double buffered)
             + B * L_pad * 4                   # alpha carry
             + C * L_pad * (4 + itemsize))     # one-hot build temporaries
    per_t = 2 * B * C * itemsize + B * L_pad * 4   # logp block (x2) + g scratch
    t_cap = max(8, min(2048, (budget - fixed) // per_t))
    if t_tile_cap is not None:
        t_cap = max(8, min(t_cap, t_tile_cap))

    if T <= t_cap:
        T_tile, T_pad = T, T
    else:
        T_tile = 0
        for d in range(t_cap - (t_cap % 8), 7, -8):   # largest mult-of-8 divisor
            if T % d == 0:
                T_tile = d
                break
        if T_tile:
            T_pad = T
        else:                                         # no clean divisor: pad T and
            T_tile = max(8, t_cap - (t_cap % 8))      # mask the extra steps in-kernel
            T_pad = ((T + T_tile - 1) // T_tile) * T_tile

    return L_pad, B, N_pad, T_tile, T_pad, vmem_cap


# --------------------------------------------------------------------------- #
# Kernel                                                                       #
# --------------------------------------------------------------------------- #
def _make_ctc_kernel(blank, B_TILE, T_tile, T_real, T_pad, C, L_pad, in_dtype,
                     unroll):
    mask_time = (T_pad != T_real)

    def kernel(logp_ref, labels_ref, loss_ref, alpha_ref, g_ref, onehot_ref):
        tc = pl.program_id(1)
        last_tc = pl.num_programs(1) - 1

        labels = labels_ref[...]                                     # (B, L_pad) int32
        lane = lax.broadcasted_iota(jnp.int32, (B_TILE, L_pad), 1)
        neg_tile = jnp.full((B_TILE, L_pad), NEG_INF, jnp.float32)

        # ---- per-batch-group one-time work (first time chunk only) -----------
        @pl.when(tc == 0)
        def _():
            # One-hot gather matrices, hoisted across all time chunks of this
            # batch group.  onehot_ref[bb] is a contiguous (C, L_pad) slab.
            c_iota = lax.broadcasted_iota(jnp.int32, (C, L_pad), 0)
            for bb in range(B_TILE):                                 # static unroll
                onehot_ref[bb] = (c_iota == labels[bb:bb + 1, :]).astype(in_dtype)
            # alpha "before t=0": 0 at extended position 0, NEG elsewhere.  One
            # recurrence step then reproduces the standard CTC alpha[0] exactly,
            # so every chunk runs a uniform [0, T_tile) loop.
            alpha_ref[...] = jnp.where(lane == 0, jnp.zeros_like(neg_tile), neg_tile)

        # ---- emission gather for this time chunk (MXU, dense stores) ---------
        # g[b, t, l] = logp[b, t, ext_label[b, l]];  g_ref layout (B, T_tile, L)
        # so every store is a contiguous (T_tile, L_pad) slab (no masked
        # single-sublane scatters on the store slot).
        for bb in range(B_TILE):                                     # static unroll
            g_ref[bb] = jnp.dot(logp_ref[bb], onehot_ref[bb],
                                preferred_element_type=jnp.float32)

        # ---- loop-invariant masks (hoisted out of the time loop) -------------
        ge1 = lane >= 1
        labels_m2 = pltpu.roll(labels, shift=2, axis=1)
        can_skip = jnp.logical_and(labels != blank, labels != labels_m2)
        can_skip = jnp.logical_and(can_skip, lane >= 2)

        t0 = tc * T_tile

        def step(t, alpha):
            a1 = jnp.where(ge1, pltpu.roll(alpha, shift=1, axis=1), neg_tile)
            a2 = jnp.where(can_skip, pltpu.roll(alpha, shift=2, axis=1), neg_tile)
            # log-sum-exp of 3 terms with only 2 exps: the max term's exp is 1.
            m01 = jnp.maximum(alpha, a1)
            n01 = jnp.minimum(alpha, a1)
            m = jnp.maximum(m01, a2)                                   # max3
            lo = jnp.minimum(n01, a2)                                  # min3
            mid = jnp.maximum(n01, jnp.minimum(m01, a2))               # median3
            s = 1.0 + jnp.exp(lo - m) + jnp.exp(mid - m)
            new = m + jnp.log(s) + g_ref[:, t, :]
            if mask_time:
                new = jnp.where(t0 + t < T_real, new, alpha)           # padded steps
            return new

        alpha = lax.fori_loop(0, T_tile, step, alpha_ref[...], unroll=unroll)
        alpha_ref[...] = alpha

        # ---- finalize on the last time chunk ---------------------------------
        @pl.when(tc == last_tc)
        def _():
            # Final-position mask rebuilt in-kernel from the labels (no fmask
            # HBM stream): target_length = #non-blank entries in ext_labels row.
            tlen = jnp.sum((labels != blank).astype(jnp.int32), axis=1,
                           keepdims=True)                              # (B, 1)
            l_last = 2 * tlen                                          # = L_ext - 1
            fmask = jnp.logical_or(lane == l_last, lane == l_last - 1)
            masked = jnp.where(fmask, alpha, neg_tile)
            m = jnp.max(masked, axis=1, keepdims=True)
            lse = m + jnp.log(jnp.sum(jnp.exp(masked - m), axis=1, keepdims=True))
            loss = -lse                                                # (B, 1)
            # zero_infinity=True: impossible alignments (~ +1e30) -> zero.
            loss = jnp.where(loss > INF_THRESH, jnp.float32(0.0), loss)
            loss_ref[...] = jnp.broadcast_to(loss, (B_TILE, 128))      # lane-dense

    return kernel


# --------------------------------------------------------------------------- #
# Wrapper                                                                      #
# --------------------------------------------------------------------------- #
@functools.partial(jax.jit, static_argnames=("blank", "t_tile_cap"))
def ctc_loss(output, target, *, blank: int, t_tile_cap=None):
    """output: (N, T, C) log-probs (native dtype); target: (N, S) int, blank-padded."""
    N, T, C = output.shape
    S = target.shape[1]
    itemsize = jnp.dtype(output.dtype).itemsize
    L_pad, B_TILE, N_pad, T_tile, T_pad, vmem_cap = _plan_tiles(
        N, T, C, S, itemsize, t_tile_cap)
    num_tc = T_pad // T_tile

    # ---- glue: unpad targets and build blank-interleaved extended labels -----
    is_blank = (target == blank)
    target_lengths = jnp.sum(~is_blank, axis=1).astype(jnp.int32)             # (N,)
    order = jnp.argsort(is_blank, axis=1, stable=True)                        # non-blanks first
    compacted = jnp.take_along_axis(target, order, axis=1).astype(jnp.int32)  # (N, S)

    blanks = jnp.full((N, S), blank, dtype=jnp.int32)
    inter = jnp.stack([blanks, compacted], axis=2).reshape(N, 2 * S)          # b,l1,b,l2,...
    tail = jnp.full((N, L_pad - 2 * S), blank, dtype=jnp.int32)
    ext_labels = jnp.concatenate([inter, tail], axis=1)                       # (N, L_pad)

    # ---- pad batch (discarded rows) and time (masked steps in-kernel) --------
    logp = output                                   # keep native dtype, no upcast
    if N_pad != N or T_pad != T:
        logp = jnp.pad(logp, ((0, N_pad - N), (0, T_pad - T), (0, 0)))
    if N_pad != N:
        ext_labels = jnp.pad(ext_labels, ((0, N_pad - N), (0, 0)),
                             constant_values=blank)

    # ---- VMEM limit from actual need, capped below the chip's capacity -------
    vmem_need = (
        2 * B_TILE * T_tile * C * itemsize        # double-buffered logp block
        + 2 * B_TILE * L_pad * 4                  # labels block
        + 2 * B_TILE * 128 * 4                    # output block
        + B_TILE * C * L_pad * itemsize           # hoisted one-hot scratch
        + B_TILE * T_tile * L_pad * 4             # gathered-emission scratch
        + B_TILE * L_pad * 4                      # alpha carry
        + T_tile * L_pad * 4                      # per-sample matmul result
        + C * L_pad * (4 + itemsize)              # one-hot / iota temporaries
    )
    vmem_limit = int(min(vmem_cap * 0.82, max(32 * 1024 * 1024, vmem_need * 1.4)))

    # Recurrence unroll: keep vreg pressure sane for wide batch tiles.
    vregs_per_temp = (B_TILE // 8) * max(1, L_pad // 128)
    unroll = max(1, min(8 if vregs_per_temp <= 2 else 4, T_tile))

    grid_spec = pltpu.PrefetchScalarGridSpec(
        num_scalar_prefetch=0,
        grid=(N_pad // B_TILE, num_tc),
        in_specs=[
            pl.BlockSpec((B_TILE, T_tile, C), lambda g, t: (g, t, 0)),
            pl.BlockSpec((B_TILE, L_pad), lambda g, t: (g, 0)),
        ],
        out_specs=pl.BlockSpec((B_TILE, 128), lambda g, t: (g, 0)),
        scratch_shapes=[
            pltpu.VMEM((B_TILE, L_pad), jnp.float32),            # alpha carry
            pltpu.VMEM((B_TILE, T_tile, L_pad), jnp.float32),    # gathered emissions
            pltpu.VMEM((B_TILE, C, L_pad), logp.dtype),          # hoisted one-hot
        ],
    )
    losses = pl.pallas_call(
        _make_ctc_kernel(blank, B_TILE, T_tile, T, T_pad, C, L_pad, logp.dtype,
                         unroll),
        out_shape=jax.ShapeDtypeStruct((N_pad, 128), jnp.float32),
        grid_spec=grid_spec,
        compiler_params=pltpu.CompilerParams(
            dimension_semantics=("parallel", "arbitrary"),
            vmem_limit_bytes=vmem_limit,
        ),
    )(logp, ext_labels)

    per_sample = losses[:N, 0]                                     # (N,)
    # reduction='mean': divide by target lengths, then batch mean.
    # TODO(synk): torch divides by the raw length (inf for empty targets under
    # zero_infinity); we clamp to 1, which differs only for empty targets.
    denom = jnp.maximum(target_lengths, 1).astype(jnp.float32)
    return jnp.mean(per_sample / denom)


# --------------------------------------------------------------------------- #
# Pure-JAX reference (validates recurrence, roll convention, tiling, masking)  #
# --------------------------------------------------------------------------- #
@functools.partial(jax.jit, static_argnames=("blank",))
def ctc_loss_reference(output, target, *, blank: int):
    N, T, C = output.shape
    S = target.shape[1]
    NEG = -1.0e30
    is_blank = target == blank
    tl = jnp.sum(~is_blank, axis=1).astype(jnp.int32)
    order = jnp.argsort(is_blank, axis=1, stable=True)
    comp = jnp.take_along_axis(target, order, axis=1).astype(jnp.int32)
    L = 2 * S + 1
    ext = jnp.full((N, L), blank, jnp.int32).at[:, 1::2].set(comp)
    pos = jnp.arange(L, dtype=jnp.int32)[None, :]
    can_skip = (ext != blank) & (ext != jnp.roll(ext, 2, axis=1)) & (pos >= 2)
    idx = jnp.broadcast_to(ext[:, None, :], (N, T, L))
    g = jnp.take_along_axis(output.astype(jnp.float32), idx, axis=2)   # (N, T, L)
    alpha0 = jnp.where(pos == 0, 0.0, NEG) + jnp.zeros((N, L), jnp.float32)

    def step(alpha, g_t):
        a1 = jnp.where(pos >= 1, jnp.roll(alpha, 1, axis=1), NEG)
        a2 = jnp.where(can_skip, jnp.roll(alpha, 2, axis=1), NEG)
        m = jnp.maximum(jnp.maximum(alpha, a1), a2)
        s = jnp.exp(alpha - m) + jnp.exp(a1 - m) + jnp.exp(a2 - m)
        return m + jnp.log(s) + g_t, None

    alpha, _ = lax.scan(step, alpha0, jnp.moveaxis(g, 1, 0))
    lb = 2 * tl[:, None]
    fmask = (pos == lb) | (pos == lb - 1)
    masked = jnp.where(fmask, alpha, NEG)
    m = jnp.max(masked, axis=1)
    lse = m + jnp.log(jnp.sum(jnp.exp(masked - m[:, None]), axis=1))
    loss = -lse
    loss = jnp.where(loss > INF_THRESH, 0.0, loss)
    denom = jnp.maximum(tl, 1).astype(jnp.float32)
    return jnp.mean(loss / denom)


if __name__ == "__main__":
    key = jax.random.PRNGKey(0)
    blank = 0

    # ---- test 1: small shapes implied by the module (single time chunk) ------
    N, T, C, S = 2, 8, 16, 4
    k1, k2, k3, k4 = jax.random.split(key, 4)
    logits = jax.random.normal(k1, (N, T, C), dtype=jnp.float32)
    output = jax.nn.log_softmax(logits, axis=-1)          # nn.CTCLoss expects log-probs
    raw = jax.random.randint(k2, (N, S), 1, C)
    lengths = jnp.array([3, 4], dtype=jnp.int32)
    pos = jnp.arange(S)[None, :]
    target = jnp.where(pos < lengths[:, None], raw, blank).astype(jnp.int32)

    loss = ctc_loss(output, target, blank=blank)
    ref = ctc_loss_reference(output, target, blank=blank)
    jax.block_until_ready((loss, ref))
    assert jnp.isfinite(loss) and float(loss) > 0.0
    assert abs(float(loss) - float(ref)) <= 1e-3 * max(1.0, abs(float(ref)))

    # ---- test 2: exercises B_TILE=16, multiple time chunks and time padding --
    N2, T2, C2, S2 = 20, 50, 32, 10
    k5, k6 = jax.random.split(k3)
    out2 = jax.nn.log_softmax(jax.random.normal(k5, (N2, T2, C2), jnp.float32), axis=-1)
    raw2 = jax.random.randint(k6, (N2, S2), 1, C2)
    len2 = jax.random.randint(k4, (N2,), 0, S2 + 1)
    pos2 = jnp.arange(S2)[None, :]
    tgt2 = jnp.where(pos2 < len2[:, None], raw2, blank).astype(jnp.int32)

    loss2 = ctc_loss(out2, tgt2, blank=blank, t_tile_cap=16)
    ref2 = ctc_loss_reference(out2, tgt2, blank=blank)
    jax.block_until_ready((loss2, ref2))
    assert jnp.isfinite(loss2)
    assert abs(float(loss2) - float(ref2)) <= 1e-3 * max(1.0, abs(float(ref2)))

    print("KERNEL_OK")
</pallas_src>

<mosaic_0001>
module attributes {stable_mosaic.version = 11 : i64} {
  func.func @kernel(%arg0: i32, %arg1: i32, %arg2: memref<8x8x16xf32, #tpu.memory_space<vmem>>, %arg3: memref<8x128xi32, #tpu.memory_space<vmem>>, %arg4: memref<8x128xf32, #tpu.memory_space<vmem>>, %arg5: memref<8x128xf32, #tpu.memory_space<vmem>>, %arg6: memref<8x8x128xf32, #tpu.memory_space<vmem>>, %arg7: memref<8x16x128xf32, #tpu.memory_space<vmem>>) attributes {dimension_semantics = [#tpu.dimension_semantics<parallel>, #tpu.dimension_semantics<arbitrary>], iteration_bounds = array<i64: 1, 1>, scalar_prefetch = 0 : i64, scratch_operands = 3 : i64, tpu.core_type = #tpu.core_type<tc>, window_params = [{transform_indices = @transform_0, window_bounds = array<i64: 8, 8, 16>}, {transform_indices = @transform_1, window_bounds = array<i64: 8, 128>}, {transform_indices = @transform_2, window_bounds = array<i64: 8, 128>}]} {
    %c0 = arith.constant 0 : index
    %c0_0 = arith.constant 0 : index
    %0 = vector.load %arg3[%c0, %c0_0] : memref<8x128xi32, #tpu.memory_space<vmem>>, vector<8x128xi32>
    %1 = tpu.iota {dimensions = array<i32: 1>} : vector<8x128xi32>
    %cst = arith.constant -1.000000e+30 : f32
    %2 = vector.broadcast %cst : f32 to vector<8x128xf32>
    %c0_i32 = arith.constant 0 : i32
    %3 = arith.cmpi eq, %arg1, %c0_i32 : i32
    %4 = arith.extui %3 : i1 to i32
    %c0_i32_1 = arith.constant 0 : i32
    %5 = arith.cmpi ne, %4, %c0_i32_1 : i32
    scf.if %5 {
      %269 = tpu.iota {dimensions = array<i32: 0>} : vector<16x128xi32>
      %270 = vector.extract_strided_slice %0 {offsets = [0, 0], sizes = [1, 128], strides = [1, 1]} : vector<8x128xi32> to vector<1x128xi32>
      %271 = vector.broadcast %270 : vector<1x128xi32> to vector<16x128xi32>
      %272 = arith.cmpi eq, %269, %271 : vector<16x128xi32>
      %273 = arith.extui %272 : vector<16x128xi1> to vector<16x128xi32>
      %274 = arith.sitofp %273 : vector<16x128xi32> to vector<16x128xf32>
      %c0_126 = arith.constant 0 : index
      %c0_127 = arith.constant 0 : index
      %c0_128 = arith.constant 0 : index
      %275 = vector.load %arg7[%c0_126, %c0_127, %c0_128] : memref<8x16x128xf32, #tpu.memory_space<vmem>>, vector<1x16x128xf32>
      %276 = vector.shape_cast %275 : vector<1x16x128xf32> to vector<16x128xf32>
      %277 = vector.shape_cast %274 : vector<16x128xf32> to vector<1x16x128xf32>
      tpu.vector_store %arg7[%c0_126, %c0_127, %c0_128], %277 {strides = array<i32>} : memref<8x16x128xf32, #tpu.memory_space<vmem>>, vector<1x16x128xf32>,
      %278 = vector.extract_strided_slice %0 {offsets = [1, 0], sizes = [1, 128], strides = [1, 1]} : vector<8x128xi32> to vector<1x128xi32>
      %279 = vector.broadcast %278 : vector<1x128xi32> to vector<16x128xi32>
      %280 = arith.cmpi eq, %269, %279 : vector<16x128xi32>
      %281 = arith.extui %280 : vector<16x128xi1> to vector<16x128xi32>
      %282 = arith.sitofp %281 : vector<16x128xi32> to vector<16x128xf32>
      %c1_129 = arith.constant 1 : index
      %c0_130 = arith.constant 0 : index
      %c0_131 = arith.constant 0 : index
      %283 = vector.load %arg7[%c1_129, %c0_130, %c0_131] : memref<8x16x128xf32, #tpu.memory_space<vmem>>, vector<1x16x128xf32>
      %284 = vector.shape_cast %283 : vector<1x16x128xf32> to vector<16x128xf32>
      %285 = vector.shape_cast %282 : vector<16x128xf32> to vector<1x16x128xf32>
      tpu.vector_store %arg7[%c1_129, %c0_130, %c0_131], %285 {strides = array<i32>} : memref<8x16x128xf32, #tpu.memory_space<vmem>>, vector<1x16x128xf32>,
      %286 = vector.extract_strided_slice %0 {offsets = [2, 0], sizes = [1, 128], strides = [1, 1]} : vector<8x128xi32> to vector<1x128xi32>
      %287 = vector.broadcast %286 : vector<1x128xi32> to vector<16x128xi32>
      %288 = arith.cmpi eq, %269, %287 : vector<16x128xi32>
      %289 = arith.extui %288 : vector<16x128xi1> to vector<16x128xi32>
      %290 = arith.sitofp %289 : vector<16x128xi32> to vector<16x128xf32>
      %c2_132 = arith.constant 2 : index
      %c0_133 = arith.constant 0 : index
      %c0_134 = arith.constant 0 : index
      %291 = vector.load %arg7[%c2_132, %c0_133, %c0_134] : memref<8x16x128xf32, #tpu.memory_space<vmem>>, vector<1x16x128xf32>
      %292 = vector.shape_cast %291 : vector<1x16x128xf32> to vector<16x128xf32>
      %293 = vector.shape_cast %290 : vector<16x128xf32> to vector<1x16x128xf32>
      tpu.vector_store %arg7[%c2_132, %c0_133, %c0_134], %293 {strides = array<i32>} : memref<8x16x128xf32, #tpu.memory_space<vmem>>, vector<1x16x128xf32>,
      %294 = vector.extract_strided_slice %0 {offsets = [3, 0], sizes = [1, 128], strides = [1, 1]} : vector<8x128xi32> to vector<1x128xi32>
      %295 = vector.broadcast %294 : vector<1x128xi32> to vector<16x128xi32>
      %296 = arith.cmpi eq, %269, %295 : vector<16x128xi32>
      %297 = arith.extui %296 : vector<16x128xi1> to vector<16x128xi32>
      %298 = arith.sitofp %297 : vector<16x128xi32> to vector<16x128xf32>
      %c3_135 = arith.constant 3 : index
      %c0_136 = arith.constant 0 : index
      %c0_137 = arith.constant 0 : index
      %299 = vector.load %arg7[%c3_135, %c0_136, %c0_137] : memref<8x16x128xf32, #tpu.memory_space<vmem>>, vector<1x16x128xf32>
      %300 = vector.shape_cast %299 : vector<1x16x128xf32> to vector<16x128xf32>
      %301 = vector.shape_cast %298 : vector<16x128xf32> to vector<1x16x128xf32>
      tpu.vector_store %arg7[%c3_135, %c0_136, %c0_137], %301 {strides = array<i32>} : memref<8x16x128xf32, #tpu.memory_space<vmem>>, vector<1x16x128xf32>,
      %302 = vector.extract_strided_slice %0 {offsets = [4, 0], sizes = [1, 128], strides = [1, 1]} : vector<8x128xi32> to vector<1x128xi32>
      %303 = vector.broadcast %302 : vector<1x128xi32> to vector<16x128xi32>
      %304 = arith.cmpi eq, %269, %303 : vector<16x128xi32>
      %305 = arith.extui %304 : vector<16x128xi1> to vector<16x128xi32>
      %306 = arith.sitofp %305 : vector<16x128xi32> to vector<16x128xf32>
      %c4_138 = arith.constant 4 : index
      %c0_139 = arith.constant 0 : index
      %c0_140 = arith.constant 0 : index
      %307 = vector.load %arg7[%c4_138, %c0_139, %c0_140] : memref<8x16x128xf32, #tpu.memory_space<vmem>>, vector<1x16x128xf32>
      %308 = vector.shape_cast %307 : vector<1x16x128xf32> to vector<16x128xf32>
      %309 = vector.shape_cast %306 : vector<16x128xf32> to vector<1x16x128xf32>
      tpu.vector_store %arg7[%c4_138, %c0_139, %c0_140], %309 {strides = array<i32>} : memref<8x16x128xf32, #tpu.memory_space<vmem>>, vector<1x16x128xf32>,
      %310 = vector.extract_strided_slice %0 {offsets = [5, 0], sizes = [1, 128], strides = [1, 1]} : vector<8x128xi32> to vector<1x128xi32>
      %311 = vector.broadcast %310 : vector<1x128xi32> to vector<16x128xi32>
      %312 = arith.cmpi eq, %269, %311 : vector<16x128xi32>
      %313 = arith.extui %312 : vector<16x128xi1> to vector<16x128xi32>
      %314 = arith.sitofp %313 : vector<16x128xi32> to vector<16x128xf32>
      %c5_141 = arith.constant 5 : index
      %c0_142 = arith.constant 0 : index
      %c0_143 = arith.constant 0 : index
      %315 = vector.load %arg7[%c5_141, %c0_142, %c0_143] : memref<8x16x128xf32, #tpu.memory_space<vmem>>, vector<1x16x128xf32>
      %316 = vector.shape_cast %315 : vector<1x16x128xf32> to vector<16x128xf32>
      %317 = vector.shape_cast %314 : vector<16x128xf32> to vector<1x16x128xf32>
      tpu.vector_store %arg7[%c5_141, %c0_142, %c0_143], %317 {strides = array<i32>} : memref<8x16x128xf32, #tpu.memory_space<vmem>>, vector<1x16x128xf32>,
      %318 = vector.extract_strided_slice %0 {offsets = [6, 0], sizes = [1, 128], strides = [1, 1]} : vector<8x128xi32> to vector<1x128xi32>
      %319 = vector.broadcast %318 : vector<1x128xi32> to vector<16x128xi32>
      %320 = arith.cmpi eq, %269, %319 : vector<16x128xi32>
      %321 = arith.extui %320 : vector<16x128xi1> to vector<16x128xi32>
      %322 = arith.sitofp %321 : vector<16x128xi32> to vector<16x128xf32>
      %c6_144 = arith.constant 6 : index
      %c0_145 = arith.constant 0 : index
      %c0_146 = arith.constant 0 : index
      %323 = vector.load %arg7[%c6_144, %c0_145, %c0_146] : memref<8x16x128xf32, #tpu.memory_space<vmem>>, vector<1x16x128xf32>
      %324 = vector.shape_cast %323 : vector<1x16x128xf32> to vector<16x128xf32>
      %325 = vector.shape_cast %322 : vector<16x128xf32> to vector<1x16x128xf32>
      tpu.vector_store %arg7[%c6_144, %c0_145, %c0_146], %325 {strides = array<i32>} : memref<8x16x128xf32, #tpu.memory_space<vmem>>, vector<1x16x128xf32>,
      %326 = vector.extract_strided_slice %0 {offsets = [7, 0], sizes = [1, 128], strides = [1, 1]} : vector<8x128xi32> to vector<1x128xi32>
      %327 = vector.broadcast %326 : vector<1x128xi32> to vector<16x128xi32>
      %328 = arith.cmpi eq, %269, %327 : vector<16x128xi32>
      %329 = arith.extui %328 : vector<16x128xi1> to vector<16x128xi32>
      %330 = arith.sitofp %329 : vector<16x128xi32> to vector<16x128xf32>
      %c7_147 = arith.constant 7 : index
      %c0_148 = arith.constant 0 : index
      %c0_149 = arith.constant 0 : index
      %331 = vector.load %arg7[%c7_147, %c0_148, %c0_149] : memref<8x16x128xf32, #tpu.memory_space<vmem>>, vector<1x16x128xf32>
      %332 = vector.shape_cast %331 : vector<1x16x128xf32> to vector<16x128xf32>
      %333 = vector.shape_cast %330 : vector<16x128xf32> to vector<1x16x128xf32>
      tpu.vector_store %arg7[%c7_147, %c0_148, %c0_149], %333 {strides = array<i32>} : memref<8x16x128xf32, #tpu.memory_space<vmem>>, vector<1x16x128xf32>,
      %c0_i32_150 = arith.constant 0 : i32
      %334 = vector.broadcast %c0_i32_150 : i32 to vector<8x128xi32>
      %335 = arith.cmpi eq, %1, %334 : vector<8x128xi32>
      %cst_151 = arith.constant 0.000000e+00 : f32
      %336 = vector.broadcast %cst_151 : f32 to vector<8x128xf32>
      %337 = arith.select %335, %336, %2 : vector<8x128xi1>, vector<8x128xf32>
      %c0_152 = arith.constant 0 : index
      %c0_153 = arith.constant 0 : index
      %338 = vector.load %arg5[%c0_152, %c0_153] : memref<8x128xf32, #tpu.memory_space<vmem>>, vector<8x128xf32>
      tpu.vector_store %arg5[%c0_152, %c0_153], %337 {strides = array<i32>} : memref<8x128xf32, #tpu.memory_space<vmem>>, vector<8x128xf32>,
    } else {
    }
    %c0_2 = arith.constant 0 : index
    %c0_3 = arith.constant 0 : index
    %c0_4 = arith.constant 0 : index
    %6 = vector.load %arg2[%c0_2, %c0_3, %c0_4] : memref<8x8x16xf32, #tpu.memory_space<vmem>>, vector<1x8x16xf32>
    %7 = vector.shape_cast %6 : vector<1x8x16xf32> to vector<8x16xf32>
    %c0_5 = arith.constant 0 : index
    %c0_6 = arith.constant 0 : index
    %c0_7 = arith.constant 0 : index
    %8 = vector.load %arg7[%c0_5, %c0_6, %c0_7] : memref<8x16x128xf32, #tpu.memory_space<vmem>>, vector<1x16x128xf32>
    %9 = vector.shape_cast %8 : vector<1x16x128xf32> to vector<16x128xf32>
    %cst_8 = arith.constant dense<0.000000e+00> : vector<8x128xf32>
    %10 = tpu.matmul %7, %9, %cst_8 {dimension_numbers = #tpu.dot_dimension_numbers<[1], [0], [0], [1], [0, 0, 1, 1], [], []>} : vector<8x16xf32>, vector<16x128xf32>, vector<8x128xf32> -> vector<8x128xf32>
    %c0_9 = arith.constant 0 : index
    %c0_10 = arith.constant 0 : index
    %c0_11 = arith.constant 0 : index
    %11 = vector.load %arg6[%c0_9, %c0_10, %c0_11] : memref<8x8x128xf32, #tpu.memory_space<vmem>>, vector<1x8x128xf32>
    %12 = vector.shape_cast %11 : vector<1x8x128xf32> to vector<8x128xf32>
    %13 = vector.shape_cast %10 : vector<8x128xf32> to vector<1x8x128xf32>
    tpu.vector_store %arg6[%c0_9, %c0_10, %c0_11], %13 {strides = array<i32>} : memref<8x8x128xf32, #tpu.memory_space<vmem>>, vector<1x8x128xf32>,
    %c1 = arith.constant 1 : index
    %c0_12 = arith.constant 0 : index
    %c0_13 = arith.constant 0 : index
    %14 = vector.load %arg2[%c1, %c0_12, %c0_13] : memref<8x8x16xf32, #tpu.memory_space<vmem>>, vector<1x8x16xf32>
    %15 = vector.shape_cast %14 : vector<1x8x16xf32> to vector<8x16xf32>
    %c1_14 = arith.constant 1 : index
    %c0_15 = arith.constant 0 : index
    %c0_16 = arith.constant 0 : index
    %16 = vector.load %arg7[%c1_14, %c0_15, %c0_16] : memref<8x16x128xf32, #tpu.memory_space<vmem>>, vector<1x16x128xf32>
    %17 = vector.shape_cast %16 : vector<1x16x128xf32> to vector<16x128xf32>
    %cst_17 = arith.constant dense<0.000000e+00> : vector<8x128xf32>
    %18 = tpu.matmul %15, %17, %cst_17 {dimension_numbers = #tpu.dot_dimension_numbers<[1], [0], [0], [1], [0, 0, 1, 1], [], []>} : vector<8x16xf32>, vector<16x128xf32>, vector<8x128xf32> -> vector<8x128xf32>
    %c1_18 = arith.constant 1 : index
    %c0_19 = arith.constant 0 : index
    %c0_20 = arith.constant 0 : index
    %19 = vector.load %arg6[%c1_18, %c0_19, %c0_20] : memref<8x8x128xf32, #tpu.memory_space<vmem>>, vector<1x8x128xf32>
    %20 = vector.shape_cast %19 : vector<1x8x128xf32> to vector<8x128xf32>
    %21 = vector.shape_cast %18 : vector<8x128xf32> to vector<1x8x128xf32>
    tpu.vector_store %arg6[%c1_18, %c0_19, %c0_20], %21 {strides = array<i32>} : memref<8x8x128xf32, #tpu.memory_space<vmem>>, vector<1x8x128xf32>,
    %c2 = arith.constant 2 : index
    %c0_21 = arith.constant 0 : index
    %c0_22 = arith.constant 0 : index
    %22 = vector.load %arg2[%c2, %c0_21, %c0_22] : memref<8x8x16xf32, #tpu.memory_space<vmem>>, vector<1x8x16xf32>
    %23 = vector.shape_cast %22 : vector<1x8x16xf32> to vector<8x16xf32>
    %c2_23 = arith.constant 2 : index
    %c0_24 = arith.constant 0 : index
    %c0_25 = arith.constant 0 : index
    %24 = vector.load %arg7[%c2_23, %c0_24, %c0_25] : memref<8x16x128xf32, #tpu.memory_space<vmem>>, vector<1x16x128xf32>
    %25 = vector.shape_cast %24 : vector<1x16x128xf32> to vector<16x128xf32>
    %cst_26 = arith.constant dense<0.000000e+00> : vector<8x128xf32>
    %26 = tpu.matmul %23, %25, %cst_26 {dimension_numbers = #tpu.dot_dimension_numbers<[1], [0], [0], [1], [0, 0, 1, 1], [], []>} : vector<8x16xf32>, vector<16x128xf32>, vector<8x128xf32> -> vector<8x128xf32>
    %c2_27 = arith.constant 2 : index
    %c0_28 = arith.constant 0 : index
    %c0_29 = arith.constant 0 : index
    %27 = vector.load %arg6[%c2_27, %c0_28, %c0_29] : memref<8x8x128xf32, #tpu.memory_space<vmem>>, vector<1x8x128xf32>
    %28 = vector.shape_cast %27 : vector<1x8x128xf32> to vector<8x128xf32>
    %29 = vector.shape_cast %26 : vector<8x128xf32> to vector<1x8x128xf32>
    tpu.vector_store %arg6[%c2_27, %c0_28, %c0_29], %29 {strides = array<i32>} : memref<8x8x128xf32, #tpu.memory_space<vmem>>, vector<1x8x128xf32>,
    %c3 = arith.constant 3 : index
    %c0_30 = arith.constant 0 : index
    %c0_31 = arith.constant 0 : index
    %30 = vector.load %arg2[%c3, %c0_30, %c0_31] : memref<8x8x16xf32, #tpu.memory_space<vmem>>, vector<1x8x16xf32>
    %31 = vector.shape_cast %30 : vector<1x8x16xf32> to vector<8x16xf32>
    %c3_32 = arith.constant 3 : index
    %c0_33 = arith.constant 0 : index
    %c0_34 = arith.constant 0 : index
    %32 = vector.load %arg7[%c3_32, %c0_33, %c0_34] : memref<8x16x128xf32, #tpu.memory_space<vmem>>, vector<1x16x128xf32>
    %33 = vector.shape_cast %32 : vector<1x16x128xf32> to vector<16x128xf32>
    %cst_35 = arith.constant dense<0.000000e+00> : vector<8x128xf32>
    %34 = tpu.matmul %31, %33, %cst_35 {dimension_numbers = #tpu.dot_dimension_numbers<[1], [0], [0], [1], [0, 0, 1, 1], [], []>} : vector<8x16xf32>, vector<16x128xf32>, vector<8x128xf32> -> vector<8x128xf32>
    %c3_36 = arith.constant 3 : index
    %c0_37 = arith.constant 0 : index
    %c0_38 = arith.constant 0 : index
    %35 = vector.load %arg6[%c3_36, %c0_37, %c0_38] : memref<8x8x128xf32, #tpu.memory_space<vmem>>, vector<1x8x128xf32>
    %36 = vector.shape_cast %35 : vector<1x8x128xf32> to vector<8x128xf32>
    %37 = vector.shape_cast %34 : vector<8x128xf32> to vector<1x8x128xf32>
    tpu.vector_store %arg6[%c3_36, %c0_37, %c0_38], %37 {strides = array<i32>} : memref<8x8x128xf32, #tpu.memory_space<vmem>>, vector<1x8x128xf32>,
    %c4 = arith.constant 4 : index
    %c0_39 = arith.constant 0 : index
    %c0_40 = arith.constant 0 : index
    %38 = vector.load %arg2[%c4, %c0_39, %c0_40] : memref<8x8x16xf32, #tpu.memory_space<vmem>>, vector<1x8x16xf32>
    %39 = vector.shape_cast %38 : vector<1x8x16xf32> to vector<8x16xf32>
    %c4_41 = arith.constant 4 : index
    %c0_42 = arith.constant 0 : index
    %c0_43 = arith.constant 0 : index
    %40 = vector.load %arg7[%c4_41, %c0_42, %c0_43] : memref<8x16x128xf32, #tpu.memory_space<vmem>>, vector<1x16x128xf32>
    %41 = vector.shape_cast %40 : vector<1x16x128xf32> to vector<16x128xf32>
    %cst_44 = arith.constant dense<0.000000e+00> : vector<8x128xf32>
    %42 = tpu.matmul %39, %41, %cst_44 {dimension_numbers = #tpu.dot_dimension_numbers<[1], [0], [0], [1], [0, 0, 1, 1], [], []>} : vector<8x16xf32>, vector<16x128xf32>, vector<8x128xf32> -> vector<8x128xf32>
    %c4_45 = arith.constant 4 : index
    %c0_46 = arith.constant 0 : index
    %c0_47 = arith.constant 0 : index
    %43 = vector.load %arg6[%c4_45, %c0_46, %c0_47] : memref<8x8x128xf32, #tpu.memory_space<vmem>>, vector<1x8x128xf32>
    %44 = vector.shape_cast %43 : vector<1x8x128xf32> to vector<8x128xf32>
    %45 = vector.shape_cast %42 : vector<8x128xf32> to vector<1x8x128xf32>
    tpu.vector_store %arg6[%c4_45, %c0_46, %c0_47], %45 {strides = array<i32>} : memref<8x8x128xf32, #tpu.memory_space<vmem>>, vector<1x8x128xf32>,
    %c5 = arith.constant 5 : index
    %c0_48 = arith.constant 0 : index
    %c0_49 = arith.constant 0 : index
    %46 = vector.load %arg2[%c5, %c0_48, %c0_49] : memref<8x8x16xf32, #tpu.memory_space<vmem>>, vector<1x8x16xf32>
    %47 = vector.shape_cast %46 : vector<1x8x16xf32> to vector<8x16xf32>
    %c5_50 = arith.constant 5 : index
    %c0_51 = arith.constant 0 : index
    %c0_52 = arith.constant 0 : index
    %48 = vector.load %arg7[%c5_50, %c0_51, %c0_52] : memref<8x16x128xf32, #tpu.memory_space<vmem>>, vector<1x16x128xf32>
    %49 = vector.shape_cast %48 : vector<1x16x128xf32> to vector<16x128xf32>
    %cst_53 = arith.constant dense<0.000000e+00> : vector<8x128xf32>
    %50 = tpu.matmul %47, %49, %cst_53 {dimension_numbers = #tpu.dot_dimension_numbers<[1], [0], [0], [1], [0, 0, 1, 1], [], []>} : vector<8x16xf32>, vector<16x128xf32>, vector<8x128xf32> -> vector<8x128xf32>
    %c5_54 = arith.constant 5 : index
    %c0_55 = arith.constant 0 : index
    %c0_56 = arith.constant 0 : index
    %51 = vector.load %arg6[%c5_54, %c0_55, %c0_56] : memref<8x8x128xf32, #tpu.memory_space<vmem>>, vector<1x8x128xf32>
    %52 = vector.shape_cast %51 : vector<1x8x128xf32> to vector<8x128xf32>
    %53 = vector.shape_cast %50 : vector<8x128xf32> to vector<1x8x128xf32>
    tpu.vector_store %arg6[%c5_54, %c0_55, %c0_56], %53 {strides = array<i32>} : memref<8x8x128xf32, #tpu.memory_space<vmem>>, vector<1x8x128xf32>,
    %c6 = arith.constant 6 : index
    %c0_57 = arith.constant 0 : index
    %c0_58 = arith.constant 0 : index
    %54 = vector.load %arg2[%c6, %c0_57, %c0_58] : memref<8x8x16xf32, #tpu.memory_space<vmem>>, vector<1x8x16xf32>
    %55 = vector.shape_cast %54 : vector<1x8x16xf32> to vector<8x16xf32>
    %c6_59 = arith.constant 6 : index
    %c0_60 = arith.constant 0 : index
    %c0_61 = arith.constant 0 : index
    %56 = vector.load %arg7[%c6_59, %c0_60, %c0_61] : memref<8x16x128xf32, #tpu.memory_space<vmem>>, vector<1x16x128xf32>
    %57 = vector.shape_cast %56 : vector<1x16x128xf32> to vector<16x128xf32>
    %cst_62 = arith.constant dense<0.000000e+00> : vector<8x128xf32>
    %58 = tpu.matmul %55, %57, %cst_62 {dimension_numbers = #tpu.dot_dimension_numbers<[1], [0], [0], [1], [0, 0, 1, 1], [], []>} : vector<8x16xf32>, vector<16x128xf32>, vector<8x128xf32> -> vector<8x128xf32>
    %c6_63 = arith.constant 6 : index
    %c0_64 = arith.constant 0 : index
    %c0_65 = arith.constant 0 : index
    %59 = vector.load %arg6[%c6_63, %c0_64, %c0_65] : memref<8x8x128xf32, #tpu.memory_space<vmem>>, vector<1x8x128xf32>
    %60 = vector.shape_cast %59 : vector<1x8x128xf32> to vector<8x128xf32>
    %61 = vector.shape_cast %58 : vector<8x128xf32> to vector<1x8x128xf32>
    tpu.vector_store %arg6[%c6_63, %c0_64, %c0_65], %61 {strides = array<i32>} : memref<8x8x128xf32, #tpu.memory_space<vmem>>, vector<1x8x128xf32>,
    %c7 = arith.constant 7 : index
    %c0_66 = arith.constant 0 : index
    %c0_67 = arith.constant 0 : index
    %62 = vector.load %arg2[%c7, %c0_66, %c0_67] : memref<8x8x16xf32, #tpu.memory_space<vmem>>, vector<1x8x16xf32>
    %63 = vector.shape_cast %62 : vector<1x8x16xf32> to vector<8x16xf32>
    %c7_68 = arith.constant 7 : index
    %c0_69 = arith.constant 0 : index
    %c0_70 = arith.constant 0 : index
    %64 = vector.load %arg7[%c7_68, %c0_69, %c0_70] : memref<8x16x128xf32, #tpu.memory_space<vmem>>, vector<1x16x128xf32>
    %65 = vector.shape_cast %64 : vector<1x16x128xf32> to vector<16x128xf32>
    %cst_71 = arith.constant dense<0.000000e+00> : vector<8x128xf32>
    %66 = tpu.matmul %63, %65, %cst_71 {dimension_numbers = #tpu.dot_dimension_numbers<[1], [0], [0], [1], [0, 0, 1, 1], [], []>} : vector<8x16xf32>, vector<16x128xf32>, vector<8x128xf32> -> vector<8x128xf32>
    %c7_72 = arith.constant 7 : index
    %c0_73 = arith.constant 0 : index
    %c0_74 = arith.constant 0 : index
    %67 = vector.load %arg6[%c7_72, %c0_73, %c0_74] : memref<8x8x128xf32, #tpu.memory_space<vmem>>, vector<1x8x128xf32>
    %68 = vector.shape_cast %67 : vector<1x8x128xf32> to vector<8x128xf32>
    %69 = vector.shape_cast %66 : vector<8x128xf32> to vector<1x8x128xf32>
    tpu.vector_store %arg6[%c7_72, %c0_73, %c0_74], %69 {strides = array<i32>} : memref<8x8x128xf32, #tpu.memory_space<vmem>>, vector<1x8x128xf32>,
    %c1_i32 = arith.constant 1 : i32
    %70 = vector.broadcast %c1_i32 : i32 to vector<8x128xi32>
    %71 = arith.cmpi sge, %1, %70 : vector<8x128xi32>
    %c2_i32 = arith.constant 2 : i32
    %72 = tpu.dynamic_rotate %0 by %c2_i32 dim 1 : vector<8x128xi32>, i32 -> vector<8x128xi32>
    %c0_i32_75 = arith.constant 0 : i32
    %73 = vector.broadcast %c0_i32_75 : i32 to vector<8x128xi32>
    %74 = arith.cmpi ne, %0, %73 : vector<8x128xi32>
    %75 = arith.cmpi ne, %0, %72 : vector<8x128xi32>
    %76 = arith.andi %74, %75 : vector<8x128xi1>
    %c2_i32_76 = arith.constant 2 : i32
    %77 = vector.broadcast %c2_i32_76 : i32 to vector<8x128xi32>
    %78 = arith.cmpi sge, %1, %77 : vector<8x128xi32>
    %79 = arith.andi %76, %78 : vector<8x128xi1>
    %c0_77 = arith.constant 0 : index
    %c0_78 = arith.constant 0 : index
    %80 = vector.load %arg5[%c0_77, %c0_78] : memref<8x128xf32, #tpu.memory_space<vmem>>, vector<8x128xf32>
    %c0_i32_79 = arith.constant 0 : i32
    %c1_i32_80 = arith.constant 1 : i32
    %81 = tpu.dynamic_rotate %80 by %c1_i32_80 dim 1 : vector<8x128xf32>, i32 -> vector<8x128xf32>
    %82 = arith.select %71, %81, %2 : vector<8x128xi1>, vector<8x128xf32>
    %c2_i32_81 = arith.constant 2 : i32
    %83 = tpu.dynamic_rotate %80 by %c2_i32_81 dim 1 : vector<8x128xf32>, i32 -> vector<8x128xf32>
    %84 = arith.select %79, %83, %2 : vector<8x128xi1>, vector<8x128xf32>
    %85 = arith.maximumf %80, %82 : vector<8x128xf32>
    %86 = arith.minimumf %80, %82 : vector<8x128xf32>
    %87 = arith.maximumf %85, %84 : vector<8x128xf32>
    %88 = arith.minimumf %86, %84 : vector<8x128xf32>
    %89 = arith.minimumf %85, %84 : vector<8x128xf32>
    %90 = arith.maximumf %86, %89 : vector<8x128xf32>
    %91 = arith.subf %88, %87 : vector<8x128xf32>
    %92 = math.exp %91 : vector<8x128xf32>
    %cst_82 = arith.constant 1.000000e+00 : f32
    %93 = vector.broadcast %cst_82 : f32 to vector<8x128xf32>
    %94 = arith.addf %93, %92 : vector<8x128xf32>
    %95 = arith.subf %90, %87 : vector<8x128xf32>
    %96 = math.exp %95 : vector<8x128xf32>
    %97 = arith.addf %94, %96 : vector<8x128xf32>
    %98 = math.log %97 : vector<8x128xf32>
    %99 = arith.addf %87, %98 : vector<8x128xf32>
    %c0_83 = arith.constant 0 : index
    %100 = arith.index_cast %c0_i32_79 : i32 to index
    %c0_84 = arith.constant 0 : index
    %101 = vector.load %arg6[%c0_83, %100, %c0_84] : memref<8x8x128xf32, #tpu.memory_space<vmem>>, vector<8x1x128xf32>
    %102 = vector.shape_cast %101 : vector<8x1x128xf32> to vector<8x128xf32>
    %103 = arith.addf %99, %102 : vector<8x128xf32>
    %c1_i32_85 = arith.constant 1 : i32
    %c1_i32_86 = arith.constant 1 : i32
    %104 = tpu.dynamic_rotate %103 by %c1_i32_86 dim 1 : vector<8x128xf32>, i32 -> vector<8x128xf32>
    %105 = arith.select %71, %104, %2 : vector<8x128xi1>, vector<8x128xf32>
    %c2_i32_87 = arith.constant 2 : i32
    %106 = tpu.dynamic_rotate %103 by %c2_i32_87 dim 1 : vector<8x128xf32>, i32 -> vector<8x128xf32>
    %107 = arith.select %79, %106, %2 : vector<8x128xi1>, vector<8x128xf32>
    %108 = arith.maximumf %103, %105 : vector<8x128xf32>
    %109 = arith.minimumf %103, %105 : vector<8x128xf32>
    %110 = arith.maximumf %108, %107 : vector<8x128xf32>
    %111 = arith.minimumf %109, %107 : vector<8x128xf32>
    %112 = arith.minimumf %108, %107 : vector<8x128xf32>
    %113 = arith.maximumf %109, %112 : vector<8x128xf32>
    %114 = arith.subf %111, %110 : vector<8x128xf32>
    %115 = math.exp %114 : vector<8x128xf32>
    %cst_88 = arith.constant 1.000000e+00 : f32
    %116 = vector.broadcast %cst_88 : f32 to vector<8x128xf32>
    %117 = arith.addf %116, %115 : vector<8x128xf32>
    %118 = arith.subf %113, %110 : vector<8x128xf32>
    %119 = math.exp %118 : vector<8x128xf32>
    %120 = arith.addf %117, %119 : vector<8x128xf32>
    %121 = math.log %120 : vector<8x128xf32>
    %122 = arith.addf %110, %121 : vector<8x128xf32>
    %c0_89 = arith.constant 0 : index
    %123 = arith.index_cast %c1_i32_85 : i32 to index
    %c0_90 = arith.constant 0 : index
    %124 = vector.load %arg6[%c0_89, %123, %c0_90] : memref<8x8x128xf32, #tpu.memory_space<vmem>>, vector<8x1x128xf32>
    %125 = vector.shape_cast %124 : vector<8x1x128xf32> to vector<8x128xf32>
    %126 = arith.addf %122, %125 : vector<8x128xf32>
    %c2_i32_91 = arith.constant 2 : i32
    %c1_i32_92 = arith.constant 1 : i32
    %127 = tpu.dynamic_rotate %126 by %c1_i32_92 dim 1 : vector<8x128xf32>, i32 -> vector<8x128xf32>
    %128 = arith.select %71, %127, %2 : vector<8x128xi1>, vector<8x128xf32>
    %c2_i32_93 = arith.constant 2 : i32
    %129 = tpu.dynamic_rotate %126 by %c2_i32_93 dim 1 : vector<8x128xf32>, i32 -> vector<8x128xf32>
    %130 = arith.select %79, %129, %2 : vector<8x128xi1>, vector<8x128xf32>
    %131 = arith.maximumf %126, %128 : vector<8x128xf32>
    %132 = arith.minimumf %126, %128 : vector<8x128xf32>
    %133 = arith.maximumf %131, %130 : vector<8x128xf32>
    %134 = arith.minimumf %132, %130 : vector<8x128xf32>
    %135 = arith.minimumf %131, %130 : vector<8x128xf32>
    %136 = arith.maximumf %132, %135 : vector<8x128xf32>
    %137 = arith.subf %134, %133 : vector<8x128xf32>
    %138 = math.exp %137 : vector<8x128xf32>
    %cst_94 = arith.constant 1.000000e+00 : f32
    %139 = vector.broadcast %cst_94 : f32 to vector<8x128xf32>
    %140 = arith.addf %139, %138 : vector<8x128xf32>
    %141 = arith.subf %136, %133 : vector<8x128xf32>
    %142 = math.exp %141 : vector<8x128xf32>
    %143 = arith.addf %140, %142 : vector<8x128xf32>
    %144 = math.log %143 : vector<8x128xf32>
    %145 = arith.addf %133, %144 : vector<8x128xf32>
    %c0_95 = arith.constant 0 : index
    %146 = arith.index_cast %c2_i32_91 : i32 to index
    %c0_96 = arith.constant 0 : index
    %147 = vector.load %arg6[%c0_95, %146, %c0_96] : memref<8x8x128xf32, #tpu.memory_space<vmem>>, vector<8x1x128xf32>
    %148 = vector.shape_cast %147 : vector<8x1x128xf32> to vector<8x128xf32>
    %149 = arith.addf %145, %148 : vector<8x128xf32>
    %c3_i32 = arith.constant 3 : i32
    %c1_i32_97 = arith.constant 1 : i32
    %150 = tpu.dynamic_rotate %149 by %c1_i32_97 dim 1 : vector<8x128xf32>, i32 -> vector<8x128xf32>
    %151 = arith.select %71, %150, %2 : vector<8x128xi1>, vector<8x128xf32>
    %c2_i32_98 = arith.constant 2 : i32
    %152 = tpu.dynamic_rotate %149 by %c2_i32_98 dim 1 : vector<8x128xf32>, i32 -> vector<8x128xf32>
    %153 = arith.select %79, %152, %2 : vector<8x128xi1>, vector<8x128xf32>
    %154 = arith.maximumf %149, %151 : vector<8x128xf32>
    %155 = arith.minimumf %149, %151 : vector<8x128xf32>
    %156 = arith.maximumf %154, %153 : vector<8x128xf32>
    %157 = arith.minimumf %155, %153 : vector<8x128xf32>
    %158 = arith.minimumf %154, %153 : vector<8x128xf32>
    %159 = arith.maximumf %155, %158 : vector<8x128xf32>
    %160 = arith.subf %157, %156 : vector<8x128xf32>
    %161 = math.exp %160 : vector<8x128xf32>
    %cst_99 = arith.constant 1.000000e+00 : f32
    %162 = vector.broadcast %cst_99 : f32 to vector<8x128xf32>
    %163 = arith.addf %162, %161 : vector<8x128xf32>
    %164 = arith.subf %159, %156 : vector<8x128xf32>
    %165 = math.exp %164 : vector<8x128xf32>
    %166 = arith.addf %163, %165 : vector<8x128xf32>
    %167 = math.log %166 : vector<8x128xf32>
    %168 = arith.addf %156, %167 : vector<8x128xf32>
    %c0_100 = arith.constant 0 : index
    %169 = arith.index_cast %c3_i32 : i32 to index
    %c0_101 = arith.constant 0 : index
    %170 = vector.load %arg6[%c0_100, %169, %c0_101] : memref<8x8x128xf32, #tpu.memory_space<vmem>>, vector<8x1x128xf32>
    %171 = vector.shape_cast %170 : vector<8x1x128xf32> to vector<8x128xf32>
    %172 = arith.addf %168, %171 : vector<8x128xf32>
    %c4_i32 = arith.constant 4 : i32
    %c1_i32_102 = arith.constant 1 : i32
    %173 = tpu.dynamic_rotate %172 by %c1_i32_102 dim 1 : vector<8x128xf32>, i32 -> vector<8x128xf32>
    %174 = arith.select %71, %173, %2 : vector<8x128xi1>, vector<8x128xf32>
    %c2_i32_103 = arith.constant 2 : i32
    %175 = tpu.dynamic_rotate %172 by %c2_i32_103 dim 1 : vector<8x128xf32>, i32 -> vector<8x128xf32>
    %176 = arith.select %79, %175, %2 : vector<8x128xi1>, vector<8x128xf32>
    %177 = arith.maximumf %172, %174 : vector<8x128xf32>
    %178 = arith.minimumf %172, %174 : vector<8x128xf32>
    %179 = arith.maximumf %177, %176 : vector<8x128xf32>
    %180 = arith.minimumf %178, %176 : vector<8x128xf32>
    %181 = arith.minimumf %177, %176 : vector<8x128xf32>
    %182 = arith.maximumf %178, %181 : vector<8x128xf32>
    %183 = arith.subf %180, %179 : vector<8x128xf32>
    %184 = math.exp %183 : vector<8x128xf32>
    %cst_104 = arith.constant 1.000000e+00 : f32
    %185 = vector.broadcast %cst_104 : f32 to vector<8x128xf32>
    %186 = arith.addf %185, %184 : vector<8x128xf32>
    %187 = arith.subf %182, %179 : vector<8x128xf32>
    %188 = math.exp %187 : vector<8x128xf32>
    %189 = arith.addf %186, %188 : vector<8x128xf32>
    %190 = math.log %189 : vector<8x128xf32>
    %191 = arith.addf %179, %190 : vector<8x128xf32>
    %c0_105 = arith.constant 0 : index
    %192 = arith.index_cast %c4_i32 : i32 to index
    %c0_106 = arith.constant 0 : index
    %193 = vector.load %arg6[%c0_105, %192, %c0_106] : memref<8x8x128xf32, #tpu.memory_space<vmem>>, vector<8x1x128xf32>
    %194 = vector.shape_cast %193 : vector<8x1x128xf32> to vector<8x128xf32>
    %195 = arith.addf %191, %194 : vector<8x128xf32>
    %c5_i32 = arith.constant 5 : i32
    %c1_i32_107 = arith.constant 1 : i32
    %196 = tpu.dynamic_rotate %195 by %c1_i32_107 dim 1 : vector<8x128xf32>, i32 -> vector<8x128xf32>
    %197 = arith.select %71, %196, %2 : vector<8x128xi1>, vector<8x128xf32>
    %c2_i32_108 = arith.constant 2 : i32
    %198 = tpu.dynamic_rotate %195 by %c2_i32_108 dim 1 : vector<8x128xf32>, i32 -> vector<8x128xf32>
    %199 = arith.select %79, %198, %2 : vector<8x128xi1>, vector<8x128xf32>
    %200 = arith.maximumf %195, %197 : vector<8x128xf32>
    %201 = arith.minimumf %195, %197 : vector<8x128xf32>
    %202 = arith.maximumf %200, %199 : vector<8x128xf32>
    %203 = arith.minimumf %201, %199 : vector<8x128xf32>
    %204 = arith.minimumf %200, %199 : vector<8x128xf32>
    %205 = arith.maximumf %201, %204 : vector<8x128xf32>
    %206 = arith.subf %203, %202 : vector<8x128xf32>
    %207 = math.exp %206 : vector<8x128xf32>
    %cst_109 = arith.constant 1.000000e+00 : f32
    %208 = vector.broadcast %cst_109 : f32 to vector<8x128xf32>
    %209 = arith.addf %208, %207 : vector<8x128xf32>
    %210 = arith.subf %205, %202 : vector<8x128xf32>
    %211 = math.exp %210 : vector<8x128xf32>
    %212 = arith.addf %209, %211 : vector<8x128xf32>
    %213 = math.log %212 : vector<8x128xf32>
    %214 = arith.addf %202, %213 : vector<8x128xf32>
    %c0_110 = arith.constant 0 : index
    %215 = arith.index_cast %c5_i32 : i32 to index
    %c0_111 = arith.constant 0 : index
    %216 = vector.load %arg6[%c0_110, %215, %c0_111] : memref<8x8x128xf32, #tpu.memory_space<vmem>>, vector<8x1x128xf32>
    %217 = vector.shape_cast %216 : vector<8x1x128xf32> to vector<8x128xf32>
    %218 = arith.addf %214, %217 : vector<8x128xf32>
    %c6_i32 = arith.constant 6 : i32
    %c1_i32_112 = arith.constant 1 : i32
    %219 = tpu.dynamic_rotate %218 by %c1_i32_112 dim 1 : vector<8x128xf32>, i32 -> vector<8x128xf32>
    %220 = arith.select %71, %219, %2 : vector<8x128xi1>, vector<8x128xf32>
    %c2_i32_113 = arith.constant 2 : i32
    %221 = tpu.dynamic_rotate %218 by %c2_i32_113 dim 1 : vector<8x128xf32>, i32 -> vector<8x128xf32>
    %222 = arith.select %79, %221, %2 : vector<8x128xi1>, vector<8x128xf32>
    %223 = arith.maximumf %218, %220 : vector<8x128xf32>
    %224 = arith.minimumf %218, %220 : vector<8x128xf32>
    %225 = arith.maximumf %223, %222 : vector<8x128xf32>
    %226 = arith.minimumf %224, %222 : vector<8x128xf32>
    %227 = arith.minimumf %223, %222 : vector<8x128xf32>
    %228 = arith.maximumf %224, %227 : vector<8x128xf32>
    %229 = arith.subf %226, %225 : vector<8x128xf32>
    %230 = math.exp %229 : vector<8x128xf32>
    %cst_114 = arith.constant 1.000000e+00 : f32
    %231 = vector.broadcast %cst_114 : f32 to vector<8x128xf32>
    %232 = arith.addf %231, %230 : vector<8x128xf32>
    %233 = arith.subf %228, %225 : vector<8x128xf32>
    %234 = math.exp %233 : vector<8x128xf32>
    %235 = arith.addf %232, %234 : vector<8x128xf32>
    %236 = math.log %235 : vector<8x128xf32>
    %237 = arith.addf %225, %236 : vector<8x128xf32>
    %c0_115 = arith.constant 0 : index
    %238 = arith.index_cast %c6_i32 : i32 to index
    %c0_116 = arith.constant 0 : index
    %239 = vector.load %arg6[%c0_115, %238, %c0_116] : memref<8x8x128xf32, #tpu.memory_space<vmem>>, vector<8x1x128xf32>
    %240 = vector.shape_cast %239 : vector<8x1x128xf32> to vector<8x128xf32>
    %241 = arith.addf %237, %240 : vector<8x128xf32>
    %c7_i32 = arith.constant 7 : i32
    %c1_i32_117 = arith.constant 1 : i32
    %242 = tpu.dynamic_rotate %241 by %c1_i32_117 dim 1 : vector<8x128xf32>, i32 -> vector<8x128xf32>
    %243 = arith.select %71, %242, %2 : vector<8x128xi1>, vector<8x128xf32>
    %c2_i32_118 = arith.constant 2 : i32
    %244 = tpu.dynamic_rotate %241 by %c2_i32_118 dim 1 : vector<8x128xf32>, i32 -> vector<8x128xf32>
    %245 = arith.select %79, %244, %2 : vector<8x128xi1>, vector<8x128xf32>
    %246 = arith.maximumf %241, %243 : vector<8x128xf32>
    %247 = arith.minimumf %241, %243 : vector<8x128xf32>
    %248 = arith.maximumf %246, %245 : vector<8x128xf32>
    %249 = arith.minimumf %247, %245 : vector<8x128xf32>
    %250 = arith.minimumf %246, %245 : vector<8x128xf32>
    %251 = arith.maximumf %247, %250 : vector<8x128xf32>
    %252 = arith.subf %249, %248 : vector<8x128xf32>
    %253 = math.exp %252 : vector<8x128xf32>
    %cst_119 = arith.constant 1.000000e+00 : f32
    %254 = vector.broadcast %cst_119 : f32 to vector<8x128xf32>
    %255 = arith.addf %254, %253 : vector<8x128xf32>
    %256 = arith.subf %251, %248 : vector<8x128xf32>
    %257 = math.exp %256 : vector<8x128xf32>
    %258 = arith.addf %255, %257 : vector<8x128xf32>
    %259 = math.log %258 : vector<8x128xf32>
    %260 = arith.addf %248, %259 : vector<8x128xf32>
    %c0_120 = arith.constant 0 : index
    %261 = arith.index_cast %c7_i32 : i32 to index
    %c0_121 = arith.constant 0 : index
    %262 = vector.load %arg6[%c0_120, %261, %c0_121] : memref<8x8x128xf32, #tpu.memory_space<vmem>>, vector<8x1x128xf32>
    %263 = vector.shape_cast %262 : vector<8x1x128xf32> to vector<8x128xf32>
    %264 = arith.addf %260, %263 : vector<8x128xf32>
    %c8_i32 = arith.constant 8 : i32
    %c0_122 = arith.constant 0 : index
    %c0_123 = arith.constant 0 : index
    %265 = vector.load %arg5[%c0_122, %c0_123] : memref<8x128xf32, #tpu.memory_space<vmem>>, vector<8x128xf32>
    tpu.vector_store %arg5[%c0_122, %c0_123], %264 {strides = array<i32>} : memref<8x128xf32, #tpu.memory_space<vmem>>, vector<8x128xf32>,
    %c0_i32_124 = arith.constant 0 : i32
    %266 = arith.cmpi eq, %arg1, %c0_i32_124 : i32
    %267 = arith.extui %266 : i1 to i32
    %c0_i32_125 = arith.constant 0 : i32
    %268 = arith.cmpi ne, %267, %c0_i32_125 : i32
    scf.if %268 {
      %c0_i32_126 = arith.constant 0 : i32
      %269 = vector.broadcast %c0_i32_126 : i32 to vector<8x128xi32>
      %270 = arith.cmpi ne, %0, %269 : vector<8x128xi32>
      %271 = arith.extui %270 : vector<8x128xi1> to vector<8x128xi32>
      %cst_127 = arith.constant dense<0> : vector<8xi32>
      %272 = vector.multi_reduction <add>, %271, %cst_127 [1] : vector<8x128xi32> to vector<8xi32>
      %273 = vector.shape_cast %272 : vector<8xi32> to vector<8x1xi32>
      %c2_i32_128 = arith.constant 2 : i32
      %274 = vector.broadcast %c2_i32_128 : i32 to vector<8x1xi32>
      %275 = arith.muli %274, %273 : vector<8x1xi32>
      %276 = vector.broadcast %275 : vector<8x1xi32> to vector<8x128xi32>
      %277 = arith.cmpi eq, %1, %276 : vector<8x128xi32>
      %c1_i32_129 = arith.constant 1 : i32
      %278 = vector.broadcast %c1_i32_129 : i32 to vector<8x1xi32>
      %279 = arith.subi %275, %278 : vector<8x1xi32>
      %280 = vector.broadcast %279 : vector<8x1xi32> to vector<8x128xi32>
      %281 = arith.cmpi eq, %1, %280 : vector<8x128xi32>
      %282 = arith.ori %277, %281 : vector<8x128xi1>
      %283 = arith.select %282, %264, %2 : vector<8x128xi1>, vector<8x128xf32>
      %cst_130 = arith.constant dense<0xFF800000> : vector<8xf32>
      %284 = vector.multi_reduction <maximumf>, %283, %cst_130 [1] : vector<8x128xf32> to vector<8xf32>
      %285 = vector.shape_cast %284 : vector<8xf32> to vector<8x1xf32>
      %286 = vector.broadcast %285 : vector<8x1xf32> to vector<8x128xf32>
      %287 = arith.subf %283, %286 : vector<8x128xf32>
      %288 = math.exp %287 : vector<8x128xf32>
      %cst_131 = arith.constant dense<0.000000e+00> : vector<8xf32>
      %289 = vector.multi_reduction <add>, %288, %cst_131 [1] : vector<8x128xf32> to vector<8xf32>
      %290 = vector.shape_cast %289 : vector<8xf32> to vector<8x1xf32>
      %291 = math.log %290 : vector<8x1xf32>
      %292 = arith.addf %285, %291 : vector<8x1xf32>
      %cst_132 = arith.constant 0.000000e+00 : f32
      %293 = vector.broadcast %cst_132 : f32 to vector<8x1xf32>
      %294 = arith.subf %293, %292 : vector<8x1xf32>
      %cst_133 = arith.constant 1.000000e+29 : f32
      %295 = vector.broadcast %cst_133 : f32 to vector<8x1xf32>
      %296 = arith.cmpf ogt, %294, %295 : vector<8x1xf32>
      %cst_134 = arith.constant 0.000000e+00 : f32
      %297 = vector.broadcast %cst_134 : f32 to vector<8x1xf32>
      %298 = arith.select %296, %297, %294 : vector<8x1xi1>, vector<8x1xf32>
      %299 = vector.shape_cast %298 : vector<8x1xf32> to vector<8x1xf32>
      %300 = vector.broadcast %299 : vector<8x1xf32> to vector<8x128xf32>
      %c0_135 = arith.constant 0 : index
      %c0_136 = arith.constant 0 : index
      %301 = vector.load %arg4[%c0_135, %c0_136] : memref<8x128xf32, #tpu.memory_space<vmem>>, vector<8x128xf32>
      tpu.vector_store %arg4[%c0_135, %c0_136], %300 {strides = array<i32>} : memref<8x128xf32, #tpu.memory_space<vmem>>, vector<8x128xf32>,
    } else {
    }
    return
  }
  func.func @transform_0(%arg0: i32, %arg1: i32) -> (i32, i32, i32) {
    %c0_i32 = arith.constant 0 : i32
    %c0_i32_0 = arith.constant 0 : i32
    return %arg0, %arg1, %c0_i32 : i32, i32, i32
  }
  func.func @transform_1(%arg0: i32, %arg1: i32) -> (i32, i32) {
    %c0_i32 = arith.constant 0 : i32
    %c0_i32_0 = arith.constant 0 : i32
    return %arg0, %c0_i32 : i32, i32
  }
  func.func @transform_2(%arg0: i32, %arg1: i32) -> (i32, i32) {
    %c0_i32 = arith.constant 0 : i32
    %c0_i32_0 = arith.constant 0 : i32
    return %arg0, %c0_i32 : i32, i32
  }
}

</mosaic_0001>

<bundles_post_ra>
// kernel: ctc_loss.1
= control target key start
LH: loop header
LB: loop body
LE: loop exit
PB: predicated region body
PF: predicated region fallthrough
CT: control target
= control target key end

     0   :  { %v12_v0 = vlaneseq  ;;  %v1449_v1 = vmov 0.0   ;;  %vm1450_vm0 = vmmov 0   ;;  %s1451_s11 = smov 2   ;;  %v1452_v13 = vmov 1.0   ;;  %s1454_s27 = smov 1   ;;  %s1759_s1 = inlined_call_operand.vmem [shape: s32[8,128], index: 1, kind: input, shape index: {}]   ;;  %s1760_s0 = inlined_call_operand.vmem [shape: f32[8,8,16], index: 0, kind: input, shape index: {}]   ;;  %s1761_s2 = inlined_call_operand.vmem [shape: f32[8,128], index: 2, kind: output, shape index: {}]  }
   0x1   :  { %1334 = vmatprep.subr.mxu0 %v1449_v1  ;;  %1341 = vmatprep.subr.mxu1 %v1449_v1  ;;  %v1476_v2 = vld [vmem:[%s1759_s1] sm:$0xff]  ;;  %vm130_vm5 = vcmask 130048   ;;  %v1279_v15 = vld [vmem:[%s1760_s0 + $0x8] sm:$0xff]  ;;  %v1281_v20 = vld [vmem:[%s1760_s0 + $0x10] sm:$0xff]  ;;  %v1453_v31 = vmov -1e+30  }
   0x2   :  { %v1479_v3 = vshrl.u32 %v12_v0, 7  ;;  %1338 = vmatprep.mubr.msk.f32.mxu0 %vm1450_vm0, %v1449_v1  ;;  %1345 = vmatprep.mubr.msk.f32.mxu1 %vm1450_vm0, %v1449_v1  ;;  %v127_v14 = vld [vmem:[%s1760_s0] sm:$0xff]  ;;  %v1283_v21 = vld [vmem:[%s1760_s0 + $0x18] sm:$0xff]  ;;  %v1287_v27 = vld [vmem:[%s1760_s0 + $0x28] sm:$0xff]  ;;  %v1565_v28 = vand.u32 127, %v12_v0 }
   0x3   :  { %766 = vrot.lane.b32.xlu0 %v1476_v2, %s1451_s11  ;;  %v1285_v26 = vld [vmem:[%s1760_s0 + $0x20] sm:$0xff]  ;;  %v1289_v29 = vld [vmem:[%s1760_s0 + $0x30] sm:$0xff]  ;;  %v1291_v30 = vld [vmem:[%s1760_s0 + $0x38] sm:$0xff] }
   0x4   :  { %v1488_v4 = vadd.s32 8, %v1479_v3  ;;  %v23_v5 = vsub.s32 0, %v1479_v3  ;;  %v35_v6 = vsub.s32 1, %v1479_v3  ;;  %v48_v7 = vsub.s32 2, %v1479_v3 }
   0x5   :  { %v61_v8 = vsub.s32 3, %v1479_v3  ;;  %v74_v16 = vsub.s32 4, %v1479_v3  ;;  %v87_v17 = vsub.s32 5, %v1479_v3  ;;  %v100_v22 = vsub.s32 6, %v1479_v3 }
   0x6   :  { %v24_v9 = vrot.slane %v1476_v2, %v23_v5  ;;  %v36_v10 = vrot.slane %v1476_v2, %v35_v6  ;;  %v49_v11 = vrot.slane %v1476_v2, %v48_v7  ;;  %v113_v23 = vsub.s32 7, %v1479_v3 }
   0x7   :  { %v62_v12 = vrot.slane %v1476_v2, %v61_v8  ;;  %v75_v18 = vrot.slane %v1476_v2, %v74_v16  ;;  %v88_v19 = vrot.slane %v1476_v2, %v87_v17  ;;  %v101_v24 = vrot.slane %v1476_v2, %v100_v22 }
   0x8   :  { %vm26_vm1 = vcmp.eq.s32.totalorder %v1488_v4, %v24_v9  ;;  %vm38_vm2 = vcmp.eq.s32.totalorder %v1488_v4, %v36_v10  ;;  %vm25_vm3 = vcmp.eq.s32.totalorder %v1479_v3, %v24_v9  ;;  %vm37_vm4 = vcmp.eq.s32.totalorder %v1479_v3, %v36_v10 }
   0x9   :  { %1335 = vmatpush3.msk.msra.mxu0 %vm26_vm1, %v1452_v13  ;;  %1342 = vmatpush3.msk.msra.mxu1 %vm38_vm2, %v1452_v13  ;;  %vm51_vm6 = vcmp.eq.s32.totalorder %v1488_v4, %v49_v11  ;;  %vm64_vm7 = vcmp.eq.s32.totalorder %v1488_v4, %v62_v12  ;;  %vm50_vm8 = vcmp.eq.s32.totalorder %v1479_v3, %v49_v11  ;;  %vm124_vm2 = vcmp.eq.s32.totalorder %v1565_v28, 0 }
   0xa   :  { %1336 = vmatprep.subr.mxu0 %v1449_v1  ;;  %1343 = vmatprep.subr.mxu1 %v1449_v1  ;;  %vm63_vm9 = vcmp.eq.s32.totalorder %v1479_v3, %v62_v12  ;;  %vm77_vm10 = vcmp.eq.s32.totalorder %v1488_v4, %v75_v18  ;;  %vm90_vm11 = vcmp.eq.s32.totalorder %v1488_v4, %v88_v19  ;;  %v125_v32 = vsel %vm124_vm2, 0.0, %v1453_v31 }
   0xb   :  { %1337 = vmatpush3.msk.msra.mxu0 %vm25_vm3, %v1452_v13  ;;  %1344 = vmatpush3.msk.msra.mxu1 %vm37_vm4, %v1452_v13  ;;  %vm76_vm12 = vcmp.eq.s32.totalorder %v1479_v3, %v75_v18  ;;  %v114_v25 = vrot.slane %v1476_v2, %v113_v23  ;;  %vm89_vm13 = vcmp.eq.s32.totalorder %v1479_v3, %v88_v19  ;;  %vm768_vm4 = vcmp.ne.s32.totalorder %v1476_v2, 0 }
   0xc   :  { %1339 = vmatmul.mubr.msk.f32.vlgmr.msra.gmra.mxu0 %vm130_vm5, %v127_v14  ;;  %1346 = vmatmul.mubr.msk.f32.vlgmr.msra.gmra.mxu1 %vm130_vm5, %v1279_v15  ;;  %vm103_vm14 = vcmp.eq.s32.totalorder %v1488_v4, %v101_v24  ;;  %vm102_vm1 = vcmp.eq.s32.totalorder %v1479_v3, %v101_v24 }
   0xd   :  { %1348 = vmatprep.subr.mxu0 %v1449_v1  ;;  %1355 = vmatprep.subr.mxu1 %v1449_v1  ;;  %vm116_vm15 = vcmp.eq.s32.totalorder %v1488_v4, %v114_v25  ;;  %vm115_vm3 = vcmp.eq.s32.totalorder %v1479_v3, %v114_v25 }
   0xe   :  { %1349 = vmatpush3.msk.msra.mxu0 %vm51_vm6, %v1452_v13  ;;  %1356 = vmatpush3.msk.msra.mxu1 %vm64_vm7, %v1452_v13  ;;  %vm765_vm7 = vcmp.ge.s32.totalorder %v1565_v28, 1 }
   0xf   :  { %1350 = vmatprep.subr.mxu0 %v1449_v1  ;;  %1357 = vmatprep.subr.mxu1 %v1449_v1 }
  0x10   :  { %1351 = vmatpush3.msk.msra.mxu0 %vm50_vm8, %v1452_v13  ;;  %1352 = vmatprep.mubr.msk.f32.mxu0 %vm1450_vm0, %v1449_v1  ;;  %vm771_vm8 = vcmp.ge.s32.totalorder %v1565_v28, 2 }
  0x11   :  { %1358 = vmatpush3.msk.msra.mxu1 %vm63_vm9, %v1452_v13  ;;  %1359 = vmatprep.mubr.msk.f32.mxu1 %vm1450_vm0, %v1449_v1  ;;  %vm814_vm9 = vcmask 1041409  }
  0x12   :  { %1353 = vmatmul.mubr.msk.f32.vlgmr.msra.gmra.mxu0 %vm130_vm5, %v1281_v20  ;;  %1360 = vmatmul.mubr.msk.f32.vlgmr.msra.gmra.mxu1 %vm130_vm5, %v1283_v21 }
  0x13   :  { %1362 = vmatprep.subr.mxu0 %v1449_v1  ;;  %1369 = vmatprep.subr.mxu1 %v1449_v1 }
  0x14   :  { %1363 = vmatpush3.msk.msra.mxu0 %vm77_vm10, %v1452_v13  ;;  %1370 = vmatpush3.msk.msra.mxu1 %vm90_vm11, %v1452_v13  ;;  %vm817_vm10 = vcmask 1042434   ;;  %vm820_vm11 = vcmask 1043459  }
  0x15   :  { %1364 = vmatprep.subr.mxu0 %v1449_v1  ;;  %1371 = vmatprep.subr.mxu1 %v1449_v1 }
  0x16   :  { %1365 = vmatpush3.msk.msra.mxu0 %vm76_vm12, %v1452_v13  ;;  %1366 = vmatprep.mubr.msk.f32.mxu0 %vm1450_vm0, %v1449_v1  ;;  %vm823_vm12 = vcmask 1044484  }
  0x17   :  { %1372 = vmatpush3.msk.msra.mxu1 %vm89_vm13, %v1452_v13  ;;  %1373 = vmatprep.mubr.msk.f32.mxu1 %vm1450_vm0, %v1449_v1  ;;  %vm826_vm13 = vcmask 1045509  }
  0x18   :  { %1367 = vmatmul.mubr.msk.f32.vlgmr.msra.gmra.mxu0 %vm130_vm5, %v1285_v26  ;;  %1374 = vmatmul.mubr.msk.f32.vlgmr.msra.gmra.mxu1 %vm130_vm5, %v1287_v27 }
  0x19   :  { %1376 = vmatprep.subr.mxu0 %v1449_v1  ;;  %1383 = vmatprep.subr.mxu1 %v1449_v1 }
  0x1a   :  { %1377 = vmatpush3.msk.msra.mxu0 %vm103_vm14, %v1452_v13  ;;  %1384 = vmatpush3.msk.msra.mxu1 %vm116_vm15, %v1452_v13  ;;  %vm829_vm14 = vcmask 1046534   ;;  %vm832_vm15 = vcmask 1047559  }
  0x1b   :  { %1378 = vmatprep.subr.mxu0 %v1449_v1  ;;  %1385 = vmatprep.subr.mxu1 %v1449_v1 }
  0x1c   :  { %1379 = vmatpush3.msk.msra.mxu0 %vm102_vm1, %v1452_v13  ;;  %1380 = vmatprep.mubr.msk.f32.mxu0 %vm1450_vm0, %v1449_v1 }
  0x1d   :  { %1386 = vmatpush3.msk.msra.mxu1 %vm115_vm3, %v1452_v13  ;;  %1387 = vmatprep.mubr.msk.f32.mxu1 %vm1450_vm0, %v1449_v1 }
  0x1e   :  { %1381 = vmatmul.mubr.msk.f32.vlgmr.msra.gmra.mxu0 %vm130_vm5, %v1289_v29  ;;  %1388 = vmatmul.mubr.msk.f32.vlgmr.msra.gmra.mxu1 %vm130_vm5, %v1291_v30 }
  0x1f   :  { %774 = vrot.lane.b32.xlu0 %v125_v32, %s1454_s27  ;;  %777 = vrot.lane.b32.xlu1 %v125_v32, %s1451_s11 }
  0x75   :  { %v767_v33 = vpop.permute.xlu0 %766 }
  0x76   :  { %vm769_vm6 = vcmp.ne.s32.totalorder %v1476_v2, %v767_v33 }
  0x77   :  { %vm770_vm0 = vmand %vm768_vm4, %vm769_vm6 }
  0x78   :  { %vm1610_vm5 = vmand %vm770_vm0, %vm771_vm8 }
  0x91   :  { %v775_v34 = vpop.permute.xlu0 %774  ;;  %v778_v37 = vpop.permute.xlu1 %777 }
  0x92   :  { %v776_v35 = vsel %vm765_vm7, %v775_v34, -1e+30  ;;  %v779_v40 = vsel %vm1610_vm5, %v778_v37, -1e+30 }
  0x93   :  { %v780_v38 = vmax.f32 %v125_v32, %v776_v35  ;;  %v781_v39 = vmin.f32 %v125_v32, %v776_v35 }
  0x95   :  { %v1616_v41 = vmax.f32 %v780_v38, %v779_v40  ;;  %v783_v42 = vmin.f32 %v781_v39, %v779_v40  ;;  %v784_v43 = vmin.f32 %v780_v38, %v779_v40 }
  0x97   :  { %v785_v44 = vmax.f32 %v781_v39, %v784_v43  ;;  %v786_v45 = vsub.f32 %v783_v42, %v1616_v41 }
  0x99   :  { %v787_v46 = vmul.f32 1.442695, %v786_v45  ;;  %v790_v47 = vsub.f32 %v785_v44, %v1616_v41 }
  0x9b   :  { %1397 = vpow2.f32 %v787_v46  ;;  %v791_v48 = vmul.f32 1.442695, %v790_v47 }
  0x9d   :  { %1399 = vpow2.f32 %v791_v48 }
  0xa8   :  { %v1398_v49 = vpop.eup %1397 }
  0xa9   :  { %v789_v50 = vadd.f32 1.0, %v1398_v49 }
  0xaa   :  { %v1400_v51 = vpop.eup %1399 }
  0xab   :  { %v793_v52 = vadd.f32 %v1400_v51, %v789_v50 }
  0xad   :  { %1401 = vlog2.f32 %v793_v52 }
  0xba   :  { %v1402_v61 = vpop.eup %1401 }
  0xbb   :  { %v1620_v3 = vmul.f32 0.6931472, %v1402_v61 }
  0xcc   :  { %v200_v53 = vpop.f32.mrf.mxu0  ;;  %v279_v54 = vpop.f32.mrf.mxu1 }
  0xcd   :  { %204 = vst [vmem:[#allocation3] sm:$0xff] %v200_v53  ;;  %284 = vst [vmem:[#allocation3 + $0x8] sm:$0xff] %v279_v54 }
  0xce   :  { %v1340_v55 = vpop.f32.mrf.mxu0  ;;  %v1347_v56 = vpop.f32.mrf.mxu1 }
  0xd2   :  { %v359_v57 = vpop.f32.mrf.mxu0  ;;  %v439_v58 = vpop.f32.mrf.mxu1 }
  0xd3   :  { %364 = vst [vmem:[#allocation3 + $0x10] sm:$0xff] %v359_v57  ;;  %444 = vst [vmem:[#allocation3 + $0x18] sm:$0xff] %v439_v58 }
  0xd4   :  { %v1354_v59 = vpop.f32.mrf.mxu0  ;;  %v1361_v60 = vpop.f32.mrf.mxu1  ;;  %v798_v62 = vld [vmem:[#allocation3 + $0x8] sm:$0x1]  ;;  %v860_v63 = vld [vmem:[#allocation3 + $0x9] sm:$0x1]  ;;  %v915_v0 = vld [vmem:[#allocation3 + $0xa] sm:$0x1] }
  0xd5   :  { %v970_v1 = vld [vmem:[#allocation3 + $0xb] sm:$0x1]  ;;  %v813_v6 = vrot.slane %v798_v62, 7  ;;  %v875_v7 = vrot.slane %v860_v63, 7  ;;  %v1025_v8 = vld [vmem:[#allocation3 + $0xc] sm:$0x1] }
  0xd6   :  { %v797_v9 = vld [vmem:[#allocation3] sm:$0x1]  ;;  %v859_v10 = vld [vmem:[#allocation3 + $0x1] sm:$0x1]  ;;  %v930_v11 = vrot.slane %v915_v0, 7  ;;  %v985_v12 = vrot.slane %v970_v1, 7 }
  0xd7   :  { %v1622_v13 = vld [vmem:[#allocation3 + $0xd] sm:$0x1]  ;;  %v914_v19 = vld [vmem:[#allocation3 + $0x2] sm:$0x1]  ;;  %v969_v24 = vld [vmem:[#allocation3 + $0x3] sm:$0x1]  ;;  %v815_v26 = vsel %vm814_vm9, %v813_v6, %v797_v9  ;;  %v876_v27 = vsel %vm814_vm9, %v875_v7, %v859_v10 }
  0xd8   :  { %v519_v4 = vpop.f32.mrf.mxu0  ;;  %v599_v5 = vpop.f32.mrf.mxu1  ;;  %v1040_v25 = vrot.slane %v1025_v8, 7  ;;  %v1095_v32 = vrot.slane %v1622_v13, 7  ;;  %v931_v34 = vsel %vm814_vm9, %v930_v11, %v914_v19  ;;  %v986_v44 = vsel %vm814_vm9, %v985_v12, %v969_v24  ;;  %v1024_v51 = vld [vmem:[#allocation3 + $0x4] sm:$0x1]  ;;  %v1079_v63 = vld [vmem:[#allocation3 + $0x5] sm:$0x1] }
  0xd9   :  { %524 = vst [vmem:[#allocation3 + $0x20] sm:$0xff] %v519_v4  ;;  %604 = vst [vmem:[#allocation3 + $0x28] sm:$0xff] %v599_v5 }
  0xda   :  { %v1368_v14 = vpop.f32.mrf.mxu0  ;;  %v1375_v15 = vpop.f32.mrf.mxu1  ;;  %v799_v16 = vld [vmem:[#allocation3 + $0x10] sm:$0x1]  ;;  %v800_v17 = vld [vmem:[#allocation3 + $0x18] sm:$0x1]  ;;  %v861_v18 = vld [vmem:[#allocation3 + $0x11] sm:$0x1]  ;;  %v1041_v62 = vsel %vm814_vm9, %v1040_v25, %v1024_v51 }
  0xdb   :  { %v816_v20 = vrot.slane %v799_v16, 6  ;;  %v819_v21 = vrot.slane %v800_v17, 5  ;;  %v862_v22 = vld [vmem:[#allocation3 + $0x19] sm:$0x1]  ;;  %v877_v23 = vrot.slane %v861_v18, 6  ;;  %v1096_v18 = vsel %vm814_vm9, %v1095_v32, %v1079_v63 }
  0xdc   :  { %v879_v29 = vrot.slane %v862_v22, 5  ;;  %v916_v30 = vld [vmem:[#allocation3 + $0x12] sm:$0x1]  ;;  %v917_v31 = vld [vmem:[#allocation3 + $0x1a] sm:$0x1] }
  0xdd   :  { %v878_v33 = vsel %vm817_vm10, %v877_v23, %v876_v27  ;;  %v932_v35 = vrot.slane %v916_v30, 6  ;;  %v934_v37 = vrot.slane %v917_v31, 5  ;;  %v971_v38 = vld [vmem:[#allocation3 + $0x13] sm:$0x1]  ;;  %v972_v39 = vld [vmem:[#allocation3 + $0x1b] sm:$0x1]  ;;  %v818_v49 = vsel %vm817_vm10, %v816_v20, %v815_v26 }
  0xde   :  { %v679_v40 = vpop.f32.mrf.mxu0  ;;  %v759_v42 = vpop.f32.mrf.mxu1  ;;  %v880_v43 = vsel %vm820_vm11, %v879_v29, %v878_v33  ;;  %v987_v45 = vrot.slane %v971_v38, 6  ;;  %v989_v46 = vrot.slane %v972_v39, 5  ;;  %v1026_v47 = vld [vmem:[#allocation3 + $0x14] sm:$0x1]  ;;  %v1027_v48 = vld [vmem:[#allocation3 + $0x1c] sm:$0x1]  ;;  %v821_v7 = vsel %vm820_vm11, %v819_v21, %v818_v49 }
  0xdf   :  { %684 = vst [vmem:[#allocation3 + $0x30] sm:$0xff] %v679_v40  ;;  %764 = vst [vmem:[#allocation3 + $0x38] sm:$0xff] %v759_v42  ;;  %v933_v50 = vsel %vm817_vm10, %v932_v35, %v931_v34  ;;  %v1042_v52 = vrot.slane %v1026_v47, 6  ;;  %v1044_v53 = vrot.slane %v1027_v48, 5  ;;  %v1081_v54 = vld [vmem:[#allocation3 + $0x15] sm:$0x1]  ;;  %v796_v31 = vadd.f32 %v1620_v3, %v1616_v41 }
  0xe0   :  { %v1382_v55 = vpop.f32.mrf.mxu0  ;;  %v1389_v56 = vpop.f32.mrf.mxu1  ;;  %v801_v57 = vld [vmem:[#allocation3 + $0x20] sm:$0x1]  ;;  %v802_v58 = vld [vmem:[#allocation3 + $0x28] sm:$0x1]  ;;  %v863_v59 = vld [vmem:[#allocation3 + $0x21] sm:$0x1]  ;;  %v935_v60 = vsel %vm820_vm11, %v934_v37, %v933_v50  ;;  %v988_v61 = vsel %vm817_vm10, %v987_v45, %v986_v44 }
  0xe1   :  { %v822_v0 = vrot.slane %v801_v57, 4  ;;  %v825_v1 = vrot.slane %v802_v58, 3  ;;  %v864_v4 = vld [vmem:[#allocation3 + $0x29] sm:$0x1]  ;;  %v881_v5 = vrot.slane %v863_v59, 4  ;;  %v990_v6 = vsel %vm820_vm11, %v989_v46, %v988_v61 }
  0xe2   :  { %v883_v8 = vrot.slane %v864_v4, 3  ;;  %v918_v9 = vld [vmem:[#allocation3 + $0x22] sm:$0x1]  ;;  %v919_v10 = vld [vmem:[#allocation3 + $0x2a] sm:$0x1]  ;;  %v1043_v11 = vsel %vm817_vm10, %v1042_v52, %v1041_v62  ;;  %v1097_v12 = vrot.slane %v1081_v54, 6 }
  0xe3   :  { %v882_v13 = vsel %vm823_vm12, %v881_v5, %v880_v43  ;;  %v936_v14 = vrot.slane %v918_v9, 4  ;;  %v938_v15 = vrot.slane %v919_v10, 3  ;;  %v973_v16 = vld [vmem:[#allocation3 + $0x23] sm:$0x1]  ;;  %v974_v17 = vld [vmem:[#allocation3 + $0x2b] sm:$0x1]  ;;  %v824_v19 = vsel %vm823_vm12, %v822_v0, %v821_v7 }
  0xe4   :  { %v884_v20 = vsel %vm826_vm13, %v883_v8, %v882_v13  ;;  %v991_v22 = vrot.slane %v973_v16, 4  ;;  %v993_v21 = vrot.slane %v974_v17, 3  ;;  %v1028_v23 = vld [vmem:[#allocation3 + $0x24] sm:$0x1]  ;;  %v1029_v24 = vld [vmem:[#allocation3 + $0x2c] sm:$0x1]  ;;  %v1045_v26 = vsel %vm820_vm11, %v1044_v53, %v1043_v11 }
  0xe5   :  { %v937_v25 = vsel %vm823_vm12, %v936_v14, %v935_v60  ;;  %v1046_v27 = vrot.slane %v1028_v23, 4  ;;  %v1048_v29 = vrot.slane %v1029_v24, 3  ;;  %v1082_v30 = vld [vmem:[#allocation3 + $0x1d] sm:$0x1]  ;;  %v1098_v38 = vsel %vm817_vm10, %v1097_v12, %v1096_v18  ;;  %v1083_v48 = vld [vmem:[#allocation3 + $0x25] sm:$0x1] }
  0xe6   :  { %v803_v33 = vld [vmem:[#allocation3 + $0x30] sm:$0x1]  ;;  %v804_v32 = vld [vmem:[#allocation3 + $0x38] sm:$0x1]  ;;  %v865_v34 = vld [vmem:[#allocation3 + $0x31] sm:$0x1]  ;;  %v939_v35 = vsel %vm826_vm13, %v938_v15, %v937_v25  ;;  %v992_v37 = vsel %vm823_vm12, %v991_v22, %v990_v6  ;;  %v827_v45 = vsel %vm826_vm13, %v825_v1, %v824_v19 }
  0xe7   :  { %v828_v39 = vrot.slane %v803_v33, 2  ;;  %v831_v40 = vrot.slane %v804_v32, 1  ;;  %v866_v42 = vld [vmem:[#allocation3 + $0x39] sm:$0x1]  ;;  %v885_v43 = vrot.slane %v865_v34, 2  ;;  %v994_v44 = vsel %vm826_vm13, %v993_v21, %v992_v37 }
  0xe8   :  { %v887_v46 = vrot.slane %v866_v42, 1  ;;  %v920_v47 = vld [vmem:[#allocation3 + $0x32] sm:$0x1]  ;;  %v921_v41 = vld [vmem:[#allocation3 + $0x3a] sm:$0x1]  ;;  %v1047_v3 = vsel %vm823_vm12, %v1046_v27, %v1045_v26  ;;  %v1099_v50 = vrot.slane %v1082_v30, 5 }
  0xe9   :  { %v1084_v49 = vld [vmem:[#allocation3 + $0x2d] sm:$0x1]  ;;  %v830_v51 = vsel %vm829_vm14, %v828_v39, %v827_v45  ;;  %v886_v52 = vsel %vm829_vm14, %v885_v43, %v884_v20  ;;  %v940_v53 = vrot.slane %v920_v47, 2  ;;  %v942_v54 = vrot.slane %v921_v41, 1  ;;  %v975_v55 = vld [vmem:[#allocation3 + $0x33] sm:$0x1] }
  0xea   :  { %v976_v56 = vld [vmem:[#allocation3 + $0x3b] sm:$0x1]  ;;  %v833_v57 = vsel %vm832_vm15, %v831_v40, %v830_v51  ;;  %v1657_v58 = vsel %vm832_vm15, %v887_v46, %v886_v52  ;;  %v995_v59 = vrot.slane %v975_v55, 2  ;;  %v1030_v61 = vld [vmem:[#allocation3 + $0x34] sm:$0x1]  ;;  %v1049_v1 = vsel %vm826_vm13, %v1048_v29, %v1047_v3 }
  0xeb   :  { %v997_v60 = vrot.slane %v976_v56, 1  ;;  %v1031_v62 = vld [vmem:[#allocation3 + $0x3c] sm:$0x1]  ;;  %v1659_v63 = vadd.f32 %v833_v57, %v796_v31  ;;  %v941_v0 = vsel %vm829_vm14, %v940_v53, %v939_v35  ;;  %v1050_v4 = vrot.slane %v1030_v61, 2  ;;  %v1085_v5 = vld [vmem:[#allocation3 + $0x35] sm:$0x1] }
  0xec   :  { %v1086_v6 = vld [vmem:[#allocation3 + $0x3d] sm:$0x1]  ;;  %v1664_v7 = vsel %vm832_vm15, %v942_v54, %v941_v0  ;;  %v996_v8 = vsel %vm829_vm14, %v995_v59, %v994_v44  ;;  %v1052_v9 = vrot.slane %v1031_v62, 1  ;;  %v1100_v10 = vsel %vm820_vm11, %v1099_v50, %v1098_v38  ;;  %v1135_v11 = vld [vmem:[#allocation3 + $0xe] sm:$0x1] }
  0xed   :  { %v1136_v12 = vld [vmem:[#allocation3 + $0x16] sm:$0x1]  ;;  %839 = vrot.lane.b32.xlu0 %v1659_v63, %s1451_s11  ;;  %836 = vrot.lane.b32.xlu1 %v1659_v63, %s1454_s27  ;;  %v1673_v13 = vsel %vm832_vm15, %v997_v60, %v996_v8  ;;  %v1051_v14 = vsel %vm829_vm14, %v1050_v4, %v1049_v1  ;;  %v1101_v15 = vrot.slane %v1083_v48, 4  ;;  %v1103_v16 = vrot.slane %v1084_v49, 3  ;;  %v1137_v17 = vld [vmem:[#allocation3 + $0x1e] sm:$0x1] }
  0xee   :  { %v1138_v18 = vld [vmem:[#allocation3 + $0x26] sm:$0x1]  ;;  %v1677_v19 = vsel %vm832_vm15, %v1052_v9, %v1051_v14  ;;  %v1105_v20 = vrot.slane %v1085_v5, 2  ;;  %v1107_v22 = vrot.slane %v1086_v6, 1  ;;  %v1139_v21 = vld [vmem:[#allocation3 + $0x2e] sm:$0x1] }
  0xef   :  { %v1140_v23 = vld [vmem:[#allocation3 + $0x36] sm:$0x1]  ;;  %v1102_v24 = vsel %vm823_vm12, %v1101_v15, %v1100_v10  ;;  %v1150_v25 = vrot.slane %v1135_v11, 7  ;;  %v1152_v26 = vrot.slane %v1136_v12, 6  ;;  %v1154_v27 = vrot.slane %v1137_v17, 5 }
  0xf0   :  { %v1104_v29 = vsel %vm826_vm13, %v1103_v16, %v1102_v24  ;;  %v1134_v30 = vld [vmem:[#allocation3 + $0x6] sm:$0x1]  ;;  %v1141_v31 = vld [vmem:[#allocation3 + $0x3e] sm:$0x1]  ;;  %v1156_v33 = vrot.slane %v1138_v18, 4  ;;  %v1158_v35 = vrot.slane %v1139_v21, 3 }
  0xf1   :  { %v1106_v32 = vsel %vm829_vm14, %v1105_v20, %v1104_v29  ;;  %v1151_v34 = vsel %vm814_vm9, %v1150_v25, %v1134_v30  ;;  %v1160_v37 = vrot.slane %v1140_v23, 2  ;;  %v1190_v38 = vld [vmem:[#allocation3 + $0xf] sm:$0x1]  ;;  %v1191_v39 = vld [vmem:[#allocation3 + $0x17] sm:$0x1]  ;;  %v1162_v47 = vrot.slane %v1141_v31, 1 }
  0xf2   :  { %v1684_v40 = vsel %vm832_vm15, %v1107_v22, %v1106_v32  ;;  %v1153_v42 = vsel %vm817_vm10, %v1152_v26, %v1151_v34  ;;  %v1192_v43 = vld [vmem:[#allocation3 + $0x1f] sm:$0x1]  ;;  %v1193_v44 = vld [vmem:[#allocation3 + $0x27] sm:$0x1]  ;;  %v1194_v45 = vld [vmem:[#allocation3 + $0x2f] sm:$0x1] }
  0xf3   :  { %v1155_v46 = vsel %vm820_vm11, %v1154_v27, %v1153_v42  ;;  %v1195_v41 = vld [vmem:[#allocation3 + $0x37] sm:$0x1]  ;;  %v1205_v3 = vrot.slane %v1190_v38, 7  ;;  %v1207_v48 = vrot.slane %v1191_v39, 6  ;;  %v1189_v50 = vld [vmem:[#allocation3 + $0x7] sm:$0x1] }
  0xf4   :  { %v1157_v49 = vsel %vm823_vm12, %v1156_v33, %v1155_v46  ;;  %v1196_v51 = vld [vmem:[#allocation3 + $0x3f] sm:$0x1]  ;;  %v1209_v52 = vrot.slane %v1192_v43, 5  ;;  %v1211_v53 = vrot.slane %v1193_v44, 4  ;;  %v1213_v56 = vrot.slane %v1194_v45, 3 }
  0xf5   :  { %v1159_v54 = vsel %vm826_vm13, %v1158_v35, %v1157_v49  ;;  %v1206_v55 = vsel %vm814_vm9, %v1205_v3, %v1189_v50  ;;  %v1215_v60 = vrot.slane %v1195_v41, 2  ;;  %v1217_v0 = vrot.slane %v1196_v51, 1 }
  0xf6   :  { %v1161_v57 = vsel %vm829_vm14, %v1160_v37, %v1159_v54  ;;  %v1208_v59 = vsel %vm817_vm10, %v1207_v48, %v1206_v55 }
  0xf7   :  { %v1694_v61 = vsel %vm832_vm15, %v1162_v47, %v1161_v57  ;;  %v1210_v62 = vsel %vm820_vm11, %v1209_v52, %v1208_v59 }
  0xf8   :  { %v1212_v1 = vsel %vm823_vm12, %v1211_v53, %v1210_v62 }
  0xf9   :  { %v1214_v4 = vsel %vm826_vm13, %v1213_v56, %v1212_v1 }
  0xfa   :  { %v1216_v5 = vsel %vm829_vm14, %v1215_v60, %v1214_v4 }
  0xfb   :  { %v1701_v6 = vsel %vm832_vm15, %v1217_v0, %v1216_v5 }
 0x15f   :  { %v840_v8 = vpop.permute.xlu0 %839  ;;  %v837_v9 = vpop.permute.xlu1 %836 }
 0x160   :  { %v838_v10 = vsel %vm765_vm7, %v837_v9, -1e+30  ;;  %v841_v14 = vsel %vm1610_vm5, %v840_v8, -1e+30 }
 0x161   :  { %v842_v11 = vmax.f32 %v1659_v63, %v838_v10  ;;  %v843_v12 = vmin.f32 %v1659_v63, %v838_v10 }
 0x163   :  { %v844_v15 = vmax.f32 %v842_v11, %v841_v14  ;;  %v845_v16 = vmin.f32 %v843_v12, %v841_v14  ;;  %v846_v17 = vmin.f32 %v842_v11, %v841_v14 }
 0x165   :  { %v847_v18 = vmax.f32 %v843_v12, %v846_v17  ;;  %v848_v20 = vsub.f32 %v845_v16, %v844_v15 }
 0x167   :  { %v849_v22 = vmul.f32 1.442695, %v848_v20  ;;  %v852_v21 = vsub.f32 %v847_v18, %v844_v15 }
 0x169   :  { %1403 = vpow2.f32 %v849_v22  ;;  %v853_v23 = vmul.f32 1.442695, %v852_v21 }
 0x16b   :  { %1405 = vpow2.f32 %v853_v23 }
 0x176   :  { %v1404_v24 = vpop.eup %1403 }
 0x177   :  { %v851_v25 = vadd.f32 1.0, %v1404_v24 }
 0x178   :  { %v1406_v26 = vpop.eup %1405 }
 0x179   :  { %v855_v27 = vadd.f32 %v1406_v26, %v851_v25 }
 0x17b   :  { %1407 = vlog2.f32 %v855_v27 }
 0x188   :  { %v1408_v29 = vpop.eup %1407 }
 0x189   :  { %v857_v63 = vmul.f32 0.6931472, %v1408_v29 }
 0x18b   :  { %v858_v30 = vadd.f32 %v857_v63, %v844_v15 }
 0x18d   :  { %v890_v31 = vadd.f32 %v1657_v58, %v858_v30 }
 0x18f   :  { %894 = vrot.lane.b32.xlu0 %v890_v31, %s1451_s11  ;;  %891 = vrot.lane.b32.xlu1 %v890_v31, %s1454_s27 }
 0x201   :  { %v895_v33 = vpop.permute.xlu0 %894  ;;  %v892_v32 = vpop.permute.xlu1 %891 }
 0x202   :  { %v893_v34 = vsel %vm765_vm7, %v892_v32, -1e+30  ;;  %v896_v38 = vsel %vm1610_vm5, %v895_v33, -1e+30 }
 0x203   :  { %v897_v35 = vmax.f32 %v890_v31, %v893_v34  ;;  %v898_v37 = vmin.f32 %v890_v31, %v893_v34 }
 0x205   :  { %v899_v39 = vmax.f32 %v897_v35, %v896_v38  ;;  %v900_v42 = vmin.f32 %v898_v37, %v896_v38  ;;  %v901_v43 = vmin.f32 %v897_v35, %v896_v38 }
 0x207   :  { %v902_v44 = vmax.f32 %v898_v37, %v901_v43  ;;  %v903_v45 = vsub.f32 %v900_v42, %v899_v39 }
 0x209   :  { %v904_v58 = vmul.f32 1.442695, %v903_v45  ;;  %v907_v46 = vsub.f32 %v902_v44, %v899_v39 }
 0x20b   :  { %1409 = vpow2.f32 %v904_v58  ;;  %v908_v47 = vmul.f32 1.442695, %v907_v46 }
 0x20d   :  { %1411 = vpow2.f32 %v908_v47 }
 0x218   :  { %v1410_v41 = vpop.eup %1409 }
 0x219   :  { %v906_v3 = vadd.f32 1.0, %v1410_v41 }
 0x21a   :  { %v1412_v48 = vpop.eup %1411 }
 0x21b   :  { %v910_v49 = vadd.f32 %v1412_v48, %v906_v3 }
 0x21d   :  { %1413 = vlog2.f32 %v910_v49 }
 0x22a   :  { %v1414_v50 = vpop.eup %1413 }
 0x22b   :  { %v912_v51 = vmul.f32 0.6931472, %v1414_v50 }
 0x22d   :  { %v913_v52 = vadd.f32 %v912_v51, %v899_v39 }
 0x22f   :  { %v945_v53 = vadd.f32 %v1664_v7, %v913_v52 }
 0x231   :  { %949 = vrot.lane.b32.xlu0 %v945_v53, %s1451_s11  ;;  %946 = vrot.lane.b32.xlu1 %v945_v53, %s1454_s27 }
 0x2a3   :  { %v950_v54 = vpop.permute.xlu0 %949  ;;  %v947_v55 = vpop.permute.xlu1 %946 }
 0x2a4   :  { %v948_v56 = vsel %vm765_vm7, %v947_v55, -1e+30  ;;  %v951_v60 = vsel %vm1610_vm5, %v950_v54, -1e+30 }
 0x2a5   :  { %v952_v57 = vmax.f32 %v945_v53, %v948_v56  ;;  %v953_v59 = vmin.f32 %v945_v53, %v948_v56 }
 0x2a7   :  { %v954_v62 = vmax.f32 %v952_v57, %v951_v60  ;;  %v955_v0 = vmin.f32 %v953_v59, %v951_v60  ;;  %v956_v1 = vmin.f32 %v952_v57, %v951_v60 }
 0x2a9   :  { %v957_v4 = vmax.f32 %v953_v59, %v956_v1  ;;  %v958_v5 = vsub.f32 %v955_v0, %v954_v62 }
 0x2ab   :  { %v959_v7 = vmul.f32 1.442695, %v958_v5  ;;  %v962_v8 = vsub.f32 %v957_v4, %v954_v62 }
 0x2ad   :  { %1415 = vpow2.f32 %v959_v7  ;;  %v963_v9 = vmul.f32 1.442695, %v962_v8 }
 0x2af   :  { %1417 = vpow2.f32 %v963_v9 }
 0x2ba   :  { %v1416_v10 = vpop.eup %1415 }
 0x2bb   :  { %v961_v11 = vadd.f32 1.0, %v1416_v10 }
 0x2bc   :  { %v1418_v12 = vpop.eup %1417 }
 0x2bd   :  { %v965_v14 = vadd.f32 %v1418_v12, %v961_v11 }
 0x2bf   :  { %1419 = vlog2.f32 %v965_v14 }
 0x2cc   :  { %v1420_v15 = vpop.eup %1419 }
 0x2cd   :  { %v967_v16 = vmul.f32 0.6931472, %v1420_v15 }
 0x2cf   :  { %v968_v17 = vadd.f32 %v967_v16, %v954_v62 }
 0x2d1   :  { %v1000_v18 = vadd.f32 %v1673_v13, %v968_v17 }
 0x2d3   :  { %1004 = vrot.lane.b32.xlu0 %v1000_v18, %s1451_s11  ;;  %1001 = vrot.lane.b32.xlu1 %v1000_v18, %s1454_s27 }
 0x345   :  { %v1005_v20 = vpop.permute.xlu0 %1004  ;;  %v1002_v22 = vpop.permute.xlu1 %1001 }
 0x346   :  { %v1003_v21 = vsel %vm765_vm7, %v1002_v22, -1e+30  ;;  %v1006_v25 = vsel %vm1610_vm5, %v1005_v20, -1e+30 }
 0x347   :  { %v1007_v23 = vmax.f32 %v1000_v18, %v1003_v21  ;;  %v1008_v24 = vmin.f32 %v1000_v18, %v1003_v21 }
 0x349   :  { %v1009_v26 = vmax.f32 %v1007_v23, %v1006_v25  ;;  %v1010_v27 = vmin.f32 %v1008_v24, %v1006_v25  ;;  %v1011_v29 = vmin.f32 %v1007_v23, %v1006_v25 }
 0x34b   :  { %v1012_v63 = vmax.f32 %v1008_v24, %v1011_v29  ;;  %v1013_v30 = vsub.f32 %v1010_v27, %v1009_v26  ;;  %v1455_v27 = vmov 0  }
 0x34c   :  { %v1225_v29 = vsel %vm768_vm4, 1, %v1455_v27 }
 0x34d   :  { %v1014_v13 = vmul.f32 1.442695, %v1013_v30  ;;  %v1017_v31 = vsub.f32 %v1012_v63, %v1009_v26  ;;  %v1226_v63 = vand.u32 65535, %v1225_v29 }
 0x34f   :  { %1421 = vpow2.f32 %v1014_v13  ;;  %v1018_v33 = vmul.f32 1.442695, %v1017_v31  ;;  %v1228_v30 = vcvt.s32.f32 %v1226_v63  ;;  %v1227_v13 = vshrl.u32 %v1225_v29, 16 }
 0x351   :  { %1423 = vpow2.f32 %v1018_v33  ;;  %v1229_v31 = vcvt.s32.f32 %v1227_v13 }
 0x35c   :  { %v1422_v32 = vpop.eup %1421 }
 0x35d   :  { %v1016_v34 = vadd.f32 1.0, %v1422_v32 }
 0x35e   :  { %v1424_v35 = vpop.eup %1423 }
 0x35f   :  { %v1020_v37 = vadd.f32 %v1424_v35, %v1016_v34 }
 0x361   :  { %1425 = vlog2.f32 %v1020_v37 }
 0x36e   :  { %v1426_v38 = vpop.eup %1425 }
 0x36f   :  { %v1022_v39 = vmul.f32 0.6931472, %v1426_v38 }
 0x371   :  { %v1023_v42 = vadd.f32 %v1022_v39, %v1009_v26 }
 0x373   :  { %v1055_v43 = vadd.f32 %v1677_v19, %v1023_v42 }
 0x375   :  { %1059 = vrot.lane.b32.xlu0 %v1055_v43, %s1451_s11  ;;  %1056 = vrot.lane.b32.xlu1 %v1055_v43, %s1454_s27 }
 0x3e7   :  { %v1060_v44 = vpop.permute.xlu0 %1059  ;;  %v1057_v45 = vpop.permute.xlu1 %1056 }
 0x3e8   :  { %v1058_v58 = vsel %vm765_vm7, %v1057_v45, -1e+30  ;;  %v1061_v41 = vsel %vm1610_vm5, %v1060_v44, -1e+30 }
 0x3e9   :  { %v1062_v46 = vmax.f32 %v1055_v43, %v1058_v58  ;;  %v1063_v47 = vmin.f32 %v1055_v43, %v1058_v58 }
 0x3eb   :  { %v1064_v3 = vmax.f32 %v1062_v46, %v1061_v41  ;;  %v1065_v48 = vmin.f32 %v1063_v47, %v1061_v41  ;;  %v1066_v49 = vmin.f32 %v1062_v46, %v1061_v41 }
 0x3ed   :  { %v1067_v50 = vmax.f32 %v1063_v47, %v1066_v49  ;;  %v1068_v51 = vsub.f32 %v1065_v48, %v1064_v3 }
 0x3ef   :  { %v1069_v19 = vmul.f32 1.442695, %v1068_v51  ;;  %v1072_v52 = vsub.f32 %v1067_v50, %v1064_v3 }
 0x3f1   :  { %1427 = vpow2.f32 %v1069_v19  ;;  %v1073_v53 = vmul.f32 1.442695, %v1072_v52 }
 0x3f3   :  { %1429 = vpow2.f32 %v1073_v53 }
 0x3fe   :  { %v1428_v54 = vpop.eup %1427 }
 0x3ff   :  { %v1071_v55 = vadd.f32 1.0, %v1428_v54 }
 0x400   :  { %v1430_v56 = vpop.eup %1429 }
 0x401   :  { %v1075_v57 = vadd.f32 %v1430_v56, %v1071_v55 }
 0x403   :  { %1431 = vlog2.f32 %v1075_v57 }
 0x410   :  { %v1432_v59 = vpop.eup %1431 }
 0x411   :  { %v1077_v60 = vmul.f32 0.6931472, %v1432_v59 }
 0x413   :  { %v1078_v62 = vadd.f32 %v1077_v60, %v1064_v3 }
 0x415   :  { %v1110_v0 = vadd.f32 %v1684_v40, %v1078_v62 }
 0x417   :  { %1114 = vrot.lane.b32.xlu0 %v1110_v0, %s1451_s11  ;;  %1111 = vrot.lane.b32.xlu1 %v1110_v0, %s1454_s27 }
 0x489   :  { %v1115_v1 = vpop.permute.xlu0 %1114  ;;  %v1112_v4 = vpop.permute.xlu1 %1111 }
 0x48a   :  { %v1113_v5 = vsel %vm765_vm7, %v1112_v4, -1e+30  ;;  %v1116_v9 = vsel %vm1610_vm5, %v1115_v1, -1e+30 }
 0x48b   :  { %v1117_v7 = vmax.f32 %v1110_v0, %v1113_v5  ;;  %v1118_v8 = vmin.f32 %v1110_v0, %v1113_v5 }
 0x48d   :  { %v1119_v10 = vmax.f32 %v1117_v7, %v1116_v9  ;;  %v1120_v11 = vmin.f32 %v1118_v8, %v1116_v9  ;;  %v1121_v12 = vmin.f32 %v1117_v7, %v1116_v9 }
 0x48f   :  { %v1122_v14 = vmax.f32 %v1118_v8, %v1121_v12  ;;  %v1123_v15 = vsub.f32 %v1120_v11, %v1119_v10 }
 0x491   :  { %v1124_v40 = vmul.f32 1.442695, %v1123_v15  ;;  %v1127_v16 = vsub.f32 %v1122_v14, %v1119_v10 }
 0x493   :  { %1433 = vpow2.f32 %v1124_v40  ;;  %v1128_v17 = vmul.f32 1.442695, %v1127_v16 }
 0x495   :  { %1435 = vpow2.f32 %v1128_v17 }
 0x4a0   :  { %v1434_v18 = vpop.eup %1433 }
 0x4a1   :  { %v1126_v20 = vadd.f32 1.0, %v1434_v18 }
 0x4a2   :  { %v1436_v22 = vpop.eup %1435 }
 0x4a3   :  { %v1130_v21 = vadd.f32 %v1436_v22, %v1126_v20 }
 0x4a5   :  { %1437 = vlog2.f32 %v1130_v21 }
 0x4b2   :  { %v1438_v23 = vpop.eup %1437 }
 0x4b3   :  { %v1132_v24 = vmul.f32 0.6931472, %v1438_v23 }
 0x4b5   :  { %v1133_v25 = vadd.f32 %v1132_v24, %v1119_v10 }
 0x4b7   :  { %v1165_v26 = vadd.f32 %v1694_v61, %v1133_v25 }
 0x4b9   :  { %1169 = vrot.lane.b32.xlu0 %v1165_v26, %s1451_s11  ;;  %1166 = vrot.lane.b32.xlu1 %v1165_v26, %s1454_s27 }
 0x4d8   :  { %1230 = vadd.xlane.f32.xlu0 %v1228_v30 }
 0x4dd   :  { %1232 = vadd.xlane.f32.xlu1 %v1229_v31 }
 0x52b   :  { %v1167_v33 = vpop.permute.xlu1 %1166  ;;  %v1170_v34 = vpop.permute.xlu0 %1169 }
 0x52c   :  { %v1168_v32 = vsel %vm765_vm7, %v1167_v33, -1e+30  ;;  %v1171_v37 = vsel %vm1610_vm5, %v1170_v34, -1e+30 }
 0x52d   :  { %v1172_v61 = vmax.f32 %v1165_v26, %v1168_v32  ;;  %v1173_v35 = vmin.f32 %v1165_v26, %v1168_v32 }
 0x52f   :  { %v1174_v38 = vmax.f32 %v1172_v61, %v1171_v37  ;;  %v1175_v39 = vmin.f32 %v1173_v35, %v1171_v37  ;;  %v1176_v2 = vmin.f32 %v1172_v61, %v1171_v37 }
 0x531   :  { %v1177_v42 = vmax.f32 %v1173_v35, %v1176_v2  ;;  %v1178_v43 = vsub.f32 %v1175_v39, %v1174_v38 }
 0x533   :  { %v1179_v44 = vmul.f32 1.442695, %v1178_v43  ;;  %v1182_v45 = vsub.f32 %v1177_v42, %v1174_v38 }
 0x535   :  { %1439 = vpow2.f32 %v1179_v44  ;;  %v1183_v58 = vmul.f32 1.442695, %v1182_v45 }
 0x537   :  { %1441 = vpow2.f32 %v1183_v58 }
 0x542   :  { %v1440_v46 = vpop.eup %1439 }
 0x543   :  { %v1181_v47 = vadd.f32 1.0, %v1440_v46 }
 0x544   :  { %v1442_v41 = vpop.eup %1441 }
 0x545   :  { %v1185_v3 = vadd.f32 %v1442_v41, %v1181_v47 }
 0x547   :  { %1443 = vlog2.f32 %v1185_v3 }
 0x554   :  { %v1444_v49 = vpop.eup %1443 }
 0x555   :  { %v1187_v52 = vmul.f32 0.6931472, %v1444_v49 }
 0x557   :  { %v1188_v55 = vadd.f32 %v1187_v52, %v1174_v38 }
 0x559   :  { %v1220_v57 = vadd.f32 %v1701_v6, %v1188_v55 }
 0x561   :  { %v1231_v48 = vpop.xlane.xlu0 %1230 }
 0x562   :  { %v1234_v51 = vcvt.f32.s32 %v1231_v48 }
 0x566   :  { %v1233_v50 = vpop.xlane.xlu1 %1232 }
 0x567   :  { %v1235_v36 = vcvt.f32.s32 %v1233_v50 }
 0x569   :  { %v1236_v19 = vshll.u32 %v1235_v36, 16 }
 0x56b   :  { %v1237_v53 = vadd.s32 %v1236_v19, %v1234_v51 }
 0x56d   :  { %v1238_v54 = vmul.u32 2, %v1237_v53 }
 0x56f   :  { %v1293_v56 = vadd.s32 4294967295, %v1238_v54  ;;  %vm1239_vm1 = vcmp.eq.s32.totalorder %v1565_v28, %v1238_v54 }
 0x571   :  { %vm1241_vm2 = vcmp.eq.s32.totalorder %v1565_v28, %v1293_v56 }
 0x572   :  { %vm1242_vm3 = vmor %vm1239_vm1, %vm1241_vm2 }
 0x573   :  { %v1243_v59 = vsel %vm1242_vm3, %v1220_v57, -1e+30 }
 0x574   :  { %1244 = vmax.xlane.f32.xlu0 %v1243_v59 }
 0x5fd   :  { %v1245_v60 = vpop.xlane.xlu0 %1244 }
 0x5fe   :  { %v1246_v62 = vsub.f32 %v1243_v59, %v1245_v60 }
 0x600   :  { %v1247_v0 = vmul.f32 1.442695, %v1246_v62 }
 0x602   :  { %1445 = vpow2.f32 %v1247_v0 }
 0x60f   :  { %v1446_v1 = vpop.eup %1445 }
 0x610   :  { %1249 = vadd.xlane.f32.xlu1 %v1446_v1 }
 0x699   :  { %v1250_v4 = vpop.xlane.xlu1 %1249 }
 0x69a   :  { %1447 = vlog2.f32 %v1250_v4 }
 0x6a7   :  { %v1448_v5 = vpop.eup %1447 }
 0x6a8   :  { %v1252_v7 = vmul.f32 0.6931472, %v1448_v5 }
 0x6aa   :  { %v1253_v8 = vadd.f32 %v1252_v7, %v1245_v60 }
 0x6ac   :  { %v1254_v9 = vsub.f32 0.0, %v1253_v8 }
 0x6ae   :  { %vm1255_vm4 = vcmp.gt.f32.partialorder %v1254_v9, 1e+29 }
 0x6af   :  { %v1256_v6 = vsel %vm1255_vm4, 0.0, %v1254_v9 }
 0x6b0   :  { %1257 = vst [vmem:[%s1761_s2] sm:$0xff] %v1256_v6 }

</bundles_post_ra>
